<compile_context>
chip_gen: v7x
topology: tpu7x:2x2x1
jax: 0.10.0
libtpu: 0.0.40
codegen_flags: <defaults>
</compile_context>

<pallas_src>
import math

import jax
import jax.numpy as jnp
from jax.experimental import pallas as pl
from jax.experimental.pallas import tpu as pltpu

N_OBJ = 2
N_CONSTR = 6
M = N_OBJ + N_CONSTR            # 8 feature dims, matches Y_bounds of shape (2, 8)
LANE_W = 1024                   # lane width per kernel row: 128 samples * 8 features
GROUPS = LANE_W // M            # 128 outputs per row (lane-dense output width)
MAX_TILE_R = 512                # rows per grid step (512 rows -> 2 MiB input tile)
TARGET_STEPS = 4                # >= 2 pipeline steps per TensorCore on v7x megacore
_CLAMP = 87.0                   # keep exp() finite (exp(87) ~ 6e37 < f32 max)


def _osy_util_kernel(params_ref, w_ref, x_ref, out_ref):
    # x_ref:      (T, LANE_W)        samples-interleaved data tile
    # params_ref: (3, LANE_W)        rows = [scale, shift, obj_mask] (resident)
    # w_ref:      (LANE_W, 2*GROUPS) bf16 0/1 masked group-sum matrix (resident)
    # out_ref:    (T, GROUPS)        lane-dense per-sample utilities
    scale = params_ref[0:1, :]
    shift = params_ref[1:2, :]
    omask = params_ref[2:3, :]

    # One affine + one exp over the whole dense tile:
    #   objective lanes :  e = exp((y - lo) / range)   (the objective value itself)
    #   constraint lanes:  e = exp(-50 * y / denom)    (so sigmoid = 1 / (1 + e))
    # Only the upper clamp is needed; very negative arguments harmlessly underflow.
    t = jnp.minimum(x_ref[...] * scale + shift, _CLAMP)
    e = jnp.exp(t)

    # Single fused LHS: objective lanes carry e, constraint lanes carry log(1+e)
    # (= -log(sigmoid)).  (log(1+e) instead of log1p: error << 1e-5 tolerance here.)
    is_obj = jnp.broadcast_to(omask, e.shape) > 0.5
    lhs = jnp.where(is_obj, e, jnp.log(1.0 + e))

    # Segmented per-sample sums on the MXU with one (LANE_W, 256) 0/1 matrix:
    # columns [0,128) sum the objective lanes of each sample group, columns [128,256)
    # sum the constraint lanes (masks folded into the weights).  The weights are exact
    # in bf16, so full f32 accuracy only needs the LHS mantissa: split it into three
    # bf16 terms (8+8+8 mantissa bits) and accumulate three single-pass bf16 MXU
    # matmuls into f32 (half the passes of Precision.HIGHEST, full MXU width).
    w = w_ref[...]
    hi = lhs.astype(jnp.bfloat16)
    r1 = lhs - hi.astype(jnp.float32)
    mid = r1.astype(jnp.bfloat16)
    lo = (r1 - mid.astype(jnp.float32)).astype(jnp.bfloat16)
    acc = jnp.dot(hi, w, preferred_element_type=jnp.float32)
    acc += jnp.dot(mid, w, preferred_element_type=jnp.float32)
    acc += jnp.dot(lo, w, preferred_element_type=jnp.float32)

    obj_sum = acc[:, :GROUPS]           # lane-aligned slices (128-wide), no relayout
    log_den = acc[:, GROUPS:]
    out_ref[...] = obj_sum * jnp.exp(-log_den)


def _build_tables(Y_bounds):
    """Per-feature affine scale/shift rows + fused bf16 0/1 group-selector matrix."""
    obj_lo = Y_bounds[0, :N_OBJ]
    obj_range = Y_bounds[1, :N_OBJ] - Y_bounds[0, :N_OBJ]
    denom = jnp.minimum(-Y_bounds[0, N_OBJ:], Y_bounds[1, N_OBJ:])
    scale8 = jnp.concatenate([1.0 / obj_range, -50.0 / denom])                 # (8,)
    shift8 = jnp.concatenate([-obj_lo / obj_range,
                              jnp.zeros((N_CONSTR,), jnp.float32)])            # (8,)

    reps = LANE_W // M
    feat = jnp.tile(jnp.arange(M, dtype=jnp.int32), reps)                      # lane -> feature id
    omask = (feat < N_OBJ).astype(jnp.float32)
    params = jnp.stack([jnp.tile(scale8, reps), jnp.tile(shift8, reps), omask])  # (3, LANE_W)

    # w256[l, g]        = 1 if lane l is an OBJECTIVE  lane of sample-group g
    # w256[l, 128 + g]  = 1 if lane l is a CONSTRAINT lane of sample-group g
    lane = jnp.arange(LANE_W, dtype=jnp.int32)
    grp = lane // M
    col = jnp.arange(2 * GROUPS, dtype=jnp.int32)
    col_grp = jnp.where(col < GROUPS, col, col - GROUPS)
    col_is_obj = col < GROUPS
    w256 = ((grp[:, None] == col_grp[None, :])
            & ((feat[:, None] < N_OBJ) == col_is_obj[None, :])).astype(jnp.bfloat16)
    return params, w256


def _run_kernel(params, w256, x2):
    R = x2.shape[0]
    if R <= 32:
        tile_r = R                       # tiny problem: one step, DMA cost negligible
    else:
        # Aim for ~TARGET_STEPS pipeline steps (>= 2 per core on v7x), cap at 512 rows
        # (2 MiB input tile) so double-buffered tiles stay well inside v7x's 64 MiB/TC.
        tile_r = min(MAX_TILE_R, ((-(-R // TARGET_STEPS) + 7) // 8) * 8)
    grid = (pl.cdiv(R, tile_r),)

    return pl.pallas_call(
        _osy_util_kernel,
        out_shape=jax.ShapeDtypeStruct((R, GROUPS), jnp.float32),
        grid_spec=pltpu.PrefetchScalarGridSpec(
            num_scalar_prefetch=0,
            grid=grid,
            in_specs=[
                pl.BlockSpec((3, LANE_W), lambda i: (0, 0)),             # affine params (resident)
                pl.BlockSpec((LANE_W, 2 * GROUPS), lambda i: (0, 0)),    # bf16 selector (resident)
                pl.BlockSpec((tile_r, LANE_W), lambda i: (i, 0)),        # data rows
            ],
            out_specs=pl.BlockSpec((tile_r, GROUPS), lambda i: (i, 0)),
        ),
        compiler_params=pltpu.CompilerParams(
            dimension_semantics=("parallel",),
            vmem_limit_bytes=32 * 1024 * 1024,
        ),
    )(params, w256, x2)


def _reference_util(Y, Y_bounds):
    """Module-faithful formula (also used for the <128-sample ragged tail)."""
    obj_Y = Y[..., :N_OBJ]
    constr_Y = Y[..., N_OBJ:]
    norm_obj_Y = (obj_Y - Y_bounds[0, :N_OBJ]) / (Y_bounds[1, :N_OBJ] - Y_bounds[0, :N_OBJ])
    denom = jnp.minimum(-Y_bounds[0, N_OBJ:], Y_bounds[1, N_OBJ:])
    constr_vals = jax.nn.sigmoid(50.0 * constr_Y / denom)
    return jnp.exp(norm_obj_Y).sum(-1) * jnp.prod(constr_vals, axis=-1)


@jax.jit
def osy_sigmoid_constraints_util(Y, Y_bounds):
    """Pallas implementation of OSYSigmoidConstraintsUtil.forward.

    Y: (..., 8) float32, Y_bounds: (2, 8) float32. Returns (...,) float32.
    """
    Y = jnp.asarray(Y, jnp.float32)
    Y_bounds = jnp.asarray(Y_bounds, jnp.float32)
    batch_shape = Y.shape[:-1]
    n = math.prod(batch_shape) if batch_shape else 1
    if n == 0:
        return jnp.zeros(batch_shape, jnp.float32)

    flat = Y.reshape(n, M)               # contiguous view, no copy
    n_main = (n // GROUPS) * GROUPS      # samples handled by the kernel (multiple of 128)

    pieces = []
    if n_main:
        params, w256 = _build_tables(Y_bounds)
        if n_main == n:
            x2 = flat.reshape(n_main // GROUPS, LANE_W)          # pure view, zero copies
        else:
            x2 = flat[:n_main].reshape(n_main // GROUPS, LANE_W)
        pieces.append(_run_kernel(params, w256, x2).reshape(-1))
    if n_main < n:
        # < 128-sample tail: tiny, computed directly (avoids a full-array pad copy).
        pieces.append(_reference_util(flat[n_main:], Y_bounds))

    out = pieces[0] if len(pieces) == 1 else jnp.concatenate(pieces)
    return out.reshape(batch_shape)


if __name__ == "__main__":
    key = jax.random.PRNGKey(0)

    # Deterministic Y_bounds (2, 8): lo < 0 < hi so ranges/denominators are positive.
    idx = jnp.arange(M, dtype=jnp.float32)
    Y_bounds = jnp.stack([-(1.0 + 0.1 * idx), 2.0 + 0.2 * idx])   # (2, 8)

    # Main check: Y of shape (8, 128, 8) -> n = 1024 samples (multiple of 128: no copies).
    Y = jax.random.normal(key, (8, 128, M), dtype=jnp.float32)
    util = jax.block_until_ready(osy_sigmoid_constraints_util(Y, Y_bounds))
    ref = _reference_util(Y, Y_bounds)
    assert util.shape == Y.shape[:-1]
    assert jnp.allclose(util, ref, rtol=1e-5, atol=1e-5), "mismatch vs reference"

    # Ragged check: n = 252 samples (exercises the kernel + plain-JAX tail path).
    Y2 = jax.random.normal(jax.random.PRNGKey(1), (7, 36, M), dtype=jnp.float32)
    util2 = jax.block_until_ready(osy_sigmoid_constraints_util(Y2, Y_bounds))
    ref2 = _reference_util(Y2, Y_bounds)
    assert util2.shape == Y2.shape[:-1]
    assert jnp.allclose(util2, ref2, rtol=1e-5, atol=1e-5), "mismatch vs reference (ragged)"

    print("KERNEL_OK")
</pallas_src>

<mosaic_0001>
module attributes {stable_mosaic.version = 11 : i64} {
  func.func @_osy_util_kernel(%arg0: i32, %arg1: memref<3x1024xf32, #tpu.memory_space<vmem>>, %arg2: memref<1024x256xbf16, #tpu.memory_space<vmem>>, %arg3: memref<8x1024xf32, #tpu.memory_space<vmem>>, %arg4: memref<8x128xf32, #tpu.memory_space<vmem>>) attributes {dimension_semantics = [#tpu.dimension_semantics<parallel>], iteration_bounds = array<i64: 1>, scalar_prefetch = 0 : i64, scratch_operands = 0 : i64, tpu.core_type = #tpu.core_type<tc>, window_params = [{pipeline_mode = #tpu.pipeline_mode<synchronous>, transform_indices = @transform_0, window_bounds = array<i64: 3, 1024>}, {pipeline_mode = #tpu.pipeline_mode<synchronous>, transform_indices = @transform_1, window_bounds = array<i64: 1024, 256>}, {transform_indices = @transform_2, window_bounds = array<i64: 8, 1024>}, {transform_indices = @transform_3, window_bounds = array<i64: 8, 128>}]} {
    %c0 = arith.constant 0 : index
    %c0_0 = arith.constant 0 : index
    %0 = vector.load %arg1[%c0, %c0_0] : memref<3x1024xf32, #tpu.memory_space<vmem>>, vector<1x1024xf32>
    %c1 = arith.constant 1 : index
    %c0_1 = arith.constant 0 : index
    %1 = vector.load %arg1[%c1, %c0_1] : memref<3x1024xf32, #tpu.memory_space<vmem>>, vector<1x1024xf32>
    %c2 = arith.constant 2 : index
    %c0_2 = arith.constant 0 : index
    %2 = vector.load %arg1[%c2, %c0_2] : memref<3x1024xf32, #tpu.memory_space<vmem>>, vector<1x1024xf32>
    %c0_3 = arith.constant 0 : index
    %c0_4 = arith.constant 0 : index
    %3 = vector.load %arg3[%c0_3, %c0_4] : memref<8x1024xf32, #tpu.memory_space<vmem>>, vector<8x1024xf32>
    %4 = vector.broadcast %0 : vector<1x1024xf32> to vector<8x1024xf32>
    %5 = arith.mulf %3, %4 : vector<8x1024xf32>
    %6 = vector.broadcast %1 : vector<1x1024xf32> to vector<8x1024xf32>
    %7 = arith.addf %5, %6 : vector<8x1024xf32>
    %cst = arith.constant 8.700000e+01 : f32
    %8 = vector.broadcast %cst : f32 to vector<8x1024xf32>
    %9 = arith.minimumf %7, %8 : vector<8x1024xf32>
    %10 = math.exp %9 : vector<8x1024xf32>
    %11 = vector.shape_cast %2 : vector<1x1024xf32> to vector<1x1024xf32>
    %12 = vector.broadcast %11 : vector<1x1024xf32> to vector<8x1024xf32>
    %cst_5 = arith.constant 5.000000e-01 : f32
    %13 = vector.broadcast %cst_5 : f32 to vector<8x1024xf32>
    %14 = arith.cmpf ogt, %12, %13 : vector<8x1024xf32>
    %cst_6 = arith.constant 1.000000e+00 : f32
    %15 = vector.broadcast %cst_6 : f32 to vector<8x1024xf32>
    %16 = arith.addf %15, %10 : vector<8x1024xf32>
    %17 = math.log %16 : vector<8x1024xf32>
    %18 = arith.select %14, %10, %17 : vector<8x1024xi1>, vector<8x1024xf32>
    %c0_7 = arith.constant 0 : index
    %c0_8 = arith.constant 0 : index
    %19 = vector.load %arg2[%c0_7, %c0_8] : memref<1024x256xbf16, #tpu.memory_space<vmem>>, vector<1024x256xbf16>
    %20 = arith.truncf %18 : vector<8x1024xf32> to vector<8x1024xbf16>
    %21 = arith.extf %20 : vector<8x1024xbf16> to vector<8x1024xf32>
    %22 = arith.subf %18, %21 : vector<8x1024xf32>
    %23 = arith.truncf %22 : vector<8x1024xf32> to vector<8x1024xbf16>
    %24 = arith.extf %23 : vector<8x1024xbf16> to vector<8x1024xf32>
    %25 = arith.subf %22, %24 : vector<8x1024xf32>
    %26 = arith.truncf %25 : vector<8x1024xf32> to vector<8x1024xbf16>
    %cst_9 = arith.constant dense<0.000000e+00> : vector<8x256xf32>
    %27 = tpu.matmul %20, %19, %cst_9 {dimension_numbers = #tpu.dot_dimension_numbers<[1], [0], [0], [1], [0, 0, 1, 1], [], []>} : vector<8x1024xbf16>, vector<1024x256xbf16>, vector<8x256xf32> -> vector<8x256xf32>
    %cst_10 = arith.constant dense<0.000000e+00> : vector<8x256xf32>
    %28 = tpu.matmul %23, %19, %cst_10 {dimension_numbers = #tpu.dot_dimension_numbers<[1], [0], [0], [1], [0, 0, 1, 1], [], []>} : vector<8x1024xbf16>, vector<1024x256xbf16>, vector<8x256xf32> -> vector<8x256xf32>
    %29 = arith.addf %27, %28 : vector<8x256xf32>
    %cst_11 = arith.constant dense<0.000000e+00> : vector<8x256xf32>
    %30 = tpu.matmul %26, %19, %cst_11 {dimension_numbers = #tpu.dot_dimension_numbers<[1], [0], [0], [1], [0, 0, 1, 1], [], []>} : vector<8x1024xbf16>, vector<1024x256xbf16>, vector<8x256xf32> -> vector<8x256xf32>
    %31 = arith.addf %29, %30 : vector<8x256xf32>
    %32 = vector.extract_strided_slice %31 {offsets = [0, 0], sizes = [8, 128], strides = [1, 1]} : vector<8x256xf32> to vector<8x128xf32>
    %33 = vector.extract_strided_slice %31 {offsets = [0, 128], sizes = [8, 128], strides = [1, 1]} : vector<8x256xf32> to vector<8x128xf32>
    %cst_12 = arith.constant 0.000000e+00 : f32
    %34 = vector.broadcast %cst_12 : f32 to vector<8x128xf32>
    %35 = arith.subf %34, %33 : vector<8x128xf32>
    %36 = math.exp %35 : vector<8x128xf32>
    %37 = arith.mulf %32, %36 : vector<8x128xf32>
    %c0_13 = arith.constant 0 : index
    %c0_14 = arith.constant 0 : index
    %38 = vector.load %arg4[%c0_13, %c0_14] : memref<8x128xf32, #tpu.memory_space<vmem>>, vector<8x128xf32>
    tpu.vector_store %arg4[%c0_13, %c0_14], %37 {strides = array<i32>} : memref<8x128xf32, #tpu.memory_space<vmem>>, vector<8x128xf32>,
    return
  }
  func.func @transform_0(%arg0: i32) -> (i32, i32) {
    %c0_i32 = arith.constant 0 : i32
    %c0_i32_0 = arith.constant 0 : i32
    %c0_i32_1 = arith.constant 0 : i32
    return %c0_i32, %c0_i32_0 : i32, i32
  }
  func.func @transform_1(%arg0: i32) -> (i32, i32) {
    %c0_i32 = arith.constant 0 : i32
    %c0_i32_0 = arith.constant 0 : i32
    %c0_i32_1 = arith.constant 0 : i32
    return %c0_i32, %c0_i32_0 : i32, i32
  }
  func.func @transform_2(%arg0: i32) -> (i32, i32) {
    %c0_i32 = arith.constant 0 : i32
    %c0_i32_0 = arith.constant 0 : i32
    return %arg0, %c0_i32 : i32, i32
  }
  func.func @transform_3(%arg0: i32) -> (i32, i32) {
    %c0_i32 = arith.constant 0 : i32
    %c0_i32_0 = arith.constant 0 : i32
    return %arg0, %c0_i32 : i32, i32
  }
}

</mosaic_0001>

<bundles_post_ra>
// kernel: tile.24
= control target key start
LH: loop header
LB: loop body
LE: loop exit
PB: predicated region body
PF: predicated region fallthrough
CT: control target
= control target key end

     0   :  { %s112_s0 = inlined_call_operand.vmem [shape: f32[8], index: 0, kind: input, shape index: {}]   ;;  %s113_s1 = inlined_call_operand.vmem [shape: f32[128,8], index: 1, kind: output, shape index: {}]  }
   0x1   :  { %v4_v0 = vld [vmem:[%s112_s0] ss:$0 sm:$0xff] }
   0x2   :  { %5 = vst [vmem:[%s113_s1] sm:$0xff] %v4_v0  ;;  %36 = vst [vmem:[%s113_s1 + $0x8] sm:$0xff] %v4_v0 }
   0x3   :  { %37 = vst [vmem:[%s113_s1 + $0x10] sm:$0xff] %v4_v0  ;;  %38 = vst [vmem:[%s113_s1 + $0x18] sm:$0xff] %v4_v0 }
   0x4   :  { %39 = vst [vmem:[%s113_s1 + $0x20] sm:$0xff] %v4_v0  ;;  %40 = vst [vmem:[%s113_s1 + $0x28] sm:$0xff] %v4_v0 }
   0x5   :  { %41 = vst [vmem:[%s113_s1 + $0x30] sm:$0xff] %v4_v0  ;;  %42 = vst [vmem:[%s113_s1 + $0x38] sm:$0xff] %v4_v0 }
   0x6   :  { %43 = vst [vmem:[%s113_s1 + $0x40] sm:$0xff] %v4_v0  ;;  %44 = vst [vmem:[%s113_s1 + $0x48] sm:$0xff] %v4_v0 }
   0x7   :  { %45 = vst [vmem:[%s113_s1 + $0x50] sm:$0xff] %v4_v0  ;;  %46 = vst [vmem:[%s113_s1 + $0x58] sm:$0xff] %v4_v0 }
   0x8   :  { %47 = vst [vmem:[%s113_s1 + $0x60] sm:$0xff] %v4_v0  ;;  %48 = vst [vmem:[%s113_s1 + $0x68] sm:$0xff] %v4_v0 }
   0x9   :  { %49 = vst [vmem:[%s113_s1 + $0x70] sm:$0xff] %v4_v0  ;;  %50 = vst [vmem:[%s113_s1 + $0x78] sm:$0xff] %v4_v0 }

// kernel: tile.29
= control target key start
LH: loop header
LB: loop body
LE: loop exit
PB: predicated region body
PF: predicated region fallthrough
CT: control target
= control target key end

     0   :  { %vm6_vm0 = vcmask 1043458   ;;  %vm10_vm1 = vcmask 1045508   ;;  %vm14_vm2 = vcmask 1047558   ;;  %s20_s6 = smov 3  ;;  %s23_s7 = smov 12  ;;  %vm16_vm3 = vcmask 64512   ;;  %s788_s0 = inlined_call_operand.vmem [shape: f32[128,8], index: 0, kind: input, shape index: {}]   ;;  %s789_s1 = inlined_call_operand.vmem [shape: f32[1,1024], index: 1, kind: output, shape index: {}]  }
   0x1   :  { %v417_v0 = vld [vmem:[%s788_s0 + $0xf] ss:$16 sm:%s20_s6]   ;;  %s28_s12 = smov 48  ;;  %s33_s13 = smov 192  ;;  %vm39_vm4 = vcmask 1048512   ;;  %vm62_vm5 = vcmask 982912  }
   0x2   :  { %v418_v1 = vld [vmem:[%s788_s0 + $0xf] ss:$16 sm:%s23_s7]   ;;  %s66_s18 = smov 3  ;;  %s69_s21 = smov 12  ;;  %vm85_vm6 = vcmask 917312   ;;  %vm108_vm7 = vcmask 851712  }
   0x3   :  { %v26_v2 = vsel %vm6_vm0, %v418_v1, %v417_v0  ;;  %v419_v3 = vld [vmem:[%s788_s0 + $0xf] ss:$16 sm:%s28_s12]   ;;  %v425_v6 = vld [vmem:[%s788_s0 + $0xd] ss:$16 sm:%s66_s18]   ;;  %s74_s22 = smov 48  ;;  %s79_s27 = smov 192 }
   0x4   :  { %v420_v4 = vld [vmem:[%s788_s0 + $0xf] ss:$16 sm:%s33_s13]   ;;  %v31_v5 = vsel %vm10_vm1, %v419_v3, %v26_v2  ;;  %v426_v8 = vld [vmem:[%s788_s0 + $0xd] ss:$16 sm:%s69_s21]   ;;  %s499_s28 = smov 120   ;;  %s43_s2 = smov 3 }
   0x5   :  { %v36_v7 = vsel %vm14_vm2, %v420_v4, %v31_v5  ;;  %v427_v9 = vld [vmem:[%s788_s0 + $0xd] ss:$16 sm:%s74_s22]   ;;  %v72_v10 = vsel %vm6_vm0, %v426_v8, %v425_v6  ;;  %s46_s3 = smov 12  ;;  %v421_v13 = vld [vmem:[%s788_s0 + $0xe] ss:$16 sm:%s43_s2]   ;;  %s51_s8 = smov 48 }
   0x6   :  { %37 = vrot.lane.b32.xlu0 %v36_v7, %s499_s28  ;;  %v428_v11 = vld [vmem:[%s788_s0 + $0xd] ss:$16 sm:%s79_s27]   ;;  %v77_v12 = vsel %vm10_vm1, %v427_v9, %v72_v10  ;;  %s56_s9 = smov 192  ;;  %s89_s14 = smov 3  ;;  %vm131_vm8 = vcmask 786112   ;;  %vm154_vm9 = vcmask 720512  }
   0x7   :  { %v422_v14 = vld [vmem:[%s788_s0 + $0xe] ss:$16 sm:%s46_s3]   ;;  %v82_v15 = vsel %vm14_vm2, %v428_v11, %v77_v12  ;;  %s500_s15 = smov 104   ;;  %v429_v20 = vld [vmem:[%s788_s0 + $0xc] ss:$16 sm:%s89_s14]   ;;  %s92_s18 = smov 12 }
   0x8   :  { %v49_v16 = vsel %vm6_vm0, %v422_v14, %v421_v13  ;;  %v423_v17 = vld [vmem:[%s788_s0 + $0xe] ss:$16 sm:%s51_s8]   ;;  %83 = vrot.lane.b32.xlu1 %v82_v15, %s500_s15  ;;  %s97_s19 = smov 48  ;;  %s102_s24 = smov 192  ;;  %vm177_vm10 = vcmask 654912   ;;  %vm200_vm11 = vcmask 589312  }
   0x9   :  { %v424_v18 = vld [vmem:[%s788_s0 + $0xe] ss:$16 sm:%s56_s9]   ;;  %v54_v19 = vsel %vm10_vm1, %v423_v17, %v49_v16  ;;  %v430_v22 = vld [vmem:[%s788_s0 + $0xc] ss:$16 sm:%s92_s18]   ;;  %s501_s25 = smov 112   ;;  %s112_s28 = smov 3 }
   0xa   :  { %v59_v21 = vsel %vm14_vm2, %v424_v18, %v54_v19  ;;  %v431_v23 = vld [vmem:[%s788_s0 + $0xc] ss:$16 sm:%s97_s19]   ;;  %v95_v24 = vsel %vm6_vm0, %v430_v22, %v429_v20  ;;  %s115_s29 = smov 12  ;;  %v433_v27 = vld [vmem:[%s788_s0 + $0xb] ss:$16 sm:%s112_s28]   ;;  %s120_s5 = smov 48 }
   0xb   :  { %60 = vrot.lane.b32.xlu0 %v59_v21, %s501_s25  ;;  %v432_v25 = vld [vmem:[%s788_s0 + $0xc] ss:$16 sm:%s102_s24]   ;;  %v100_v26 = vsel %vm10_vm1, %v431_v23, %v95_v24  ;;  %s125_s6 = smov 192  ;;  %s135_s11 = smov 3  ;;  %vm223_vm12 = vcmask 523712   ;;  %vm246_vm13 = vcmask 458112  }
   0xc   :  { %v434_v28 = vld [vmem:[%s788_s0 + $0xb] ss:$16 sm:%s115_s29]   ;;  %v105_v29 = vsel %vm14_vm2, %v432_v25, %v100_v26  ;;  %s502_s12 = smov 96   ;;  %v437_v34 = vld [vmem:[%s788_s0 + $0xa] ss:$16 sm:%s135_s11]   ;;  %s138_s15 = smov 12 }
   0xd   :  { %v118_v30 = vsel %vm6_vm0, %v434_v28, %v433_v27  ;;  %v435_v31 = vld [vmem:[%s788_s0 + $0xb] ss:$16 sm:%s120_s5]   ;;  %106 = vrot.lane.b32.xlu1 %v105_v29, %s502_s12  ;;  %s143_s16 = smov 48  ;;  %s148_s21 = smov 192  ;;  %vm269_vm14 = vcmask 392512   ;;  %vm292_vm15 = vcmask 326912  }
   0xe   :  { %v436_v32 = vld [vmem:[%s788_s0 + $0xb] ss:$16 sm:%s125_s6]   ;;  %v123_v33 = vsel %vm10_vm1, %v435_v31, %v118_v30  ;;  %v438_v36 = vld [vmem:[%s788_s0 + $0xa] ss:$16 sm:%s138_s15]   ;;  %s503_s22 = smov 88   ;;  %s158_s25 = smov 3 }
   0xf   :  { %v128_v35 = vsel %vm14_vm2, %v436_v32, %v123_v33  ;;  %v439_v37 = vld [vmem:[%s788_s0 + $0xa] ss:$16 sm:%s143_s16]   ;;  %v141_v38 = vsel %vm6_vm0, %v438_v36, %v437_v34  ;;  %s161_s26 = smov 12  ;;  %v441_v41 = vld [vmem:[%s788_s0 + $0x9] ss:$16 sm:%s158_s25]   ;;  %s166_s2 = smov 48 }
  0x10   :  { %129 = vrot.lane.b32.xlu0 %v128_v35, %s503_s22  ;;  %v440_v39 = vld [vmem:[%s788_s0 + $0xa] ss:$16 sm:%s148_s21]   ;;  %v146_v40 = vsel %vm10_vm1, %v439_v37, %v141_v38  ;;  %s171_s3 = smov 192  ;;  %s181_s8 = smov 3 }
  0x11   :  { %v442_v42 = vld [vmem:[%s788_s0 + $0x9] ss:$16 sm:%s161_s26]   ;;  %v151_v43 = vsel %vm14_vm2, %v440_v39, %v146_v40  ;;  %s504_s9 = smov 80   ;;  %v445_v48 = vld [vmem:[%s788_s0 + $0x8] ss:$16 sm:%s181_s8]   ;;  %s184_s12 = smov 12 }
  0x12   :  { %v164_v44 = vsel %vm6_vm0, %v442_v42, %v441_v41  ;;  %v443_v45 = vld [vmem:[%s788_s0 + $0x9] ss:$16 sm:%s166_s2]   ;;  %152 = vrot.lane.b32.xlu1 %v151_v43, %s504_s9  ;;  %s189_s13 = smov 48  ;;  %s194_s18 = smov 192 }
  0x13   :  { %v444_v46 = vld [vmem:[%s788_s0 + $0x9] ss:$16 sm:%s171_s3]   ;;  %v169_v47 = vsel %vm10_vm1, %v443_v45, %v164_v44  ;;  %v446_v50 = vld [vmem:[%s788_s0 + $0x8] ss:$16 sm:%s184_s12]   ;;  %s505_s19 = smov 72   ;;  %s204_s22 = smov 3 }
  0x14   :  { %v174_v49 = vsel %vm14_vm2, %v444_v46, %v169_v47  ;;  %v447_v51 = vld [vmem:[%s788_s0 + $0x8] ss:$16 sm:%s189_s13]   ;;  %v187_v52 = vsel %vm6_vm0, %v446_v50, %v445_v48  ;;  %s207_s23 = smov 12  ;;  %v449_v55 = vld [vmem:[%s788_s0 + $0x7] ss:$16 sm:%s204_s22]   ;;  %s212_s28 = smov 48 }
  0x15   :  { %175 = vrot.lane.b32.xlu0 %v174_v49, %s505_s19  ;;  %v448_v53 = vld [vmem:[%s788_s0 + $0x8] ss:$16 sm:%s194_s18]   ;;  %v192_v54 = vsel %vm10_vm1, %v447_v51, %v187_v52  ;;  %s217_s29 = smov 192  ;;  %s227_s5 = smov 3 }
  0x16   :  { %v450_v56 = vld [vmem:[%s788_s0 + $0x7] ss:$16 sm:%s207_s23]   ;;  %v197_v57 = vsel %vm14_vm2, %v448_v53, %v192_v54  ;;  %s506_s6 = smov 64   ;;  %v453_v62 = vld [vmem:[%s788_s0 + $0x6] ss:$16 sm:%s227_s5]   ;;  %s230_s9 = smov 12 }
  0x17   :  { %v210_v58 = vsel %vm6_vm0, %v450_v56, %v449_v55  ;;  %v451_v59 = vld [vmem:[%s788_s0 + $0x7] ss:$16 sm:%s212_s28]   ;;  %198 = vrot.lane.b32.xlu1 %v197_v57, %s506_s6  ;;  %s235_s10 = smov 48  ;;  %s240_s15 = smov 192 }
  0x18   :  { %v452_v60 = vld [vmem:[%s788_s0 + $0x7] ss:$16 sm:%s217_s29]   ;;  %v215_v61 = vsel %vm10_vm1, %v451_v59, %v210_v58  ;;  %v454_v0 = vld [vmem:[%s788_s0 + $0x6] ss:$16 sm:%s230_s9]   ;;  %s507_s16 = smov 56   ;;  %s250_s19 = smov 3 }
  0x19   :  { %v220_v63 = vsel %vm14_vm2, %v452_v60, %v215_v61  ;;  %v455_v1 = vld [vmem:[%s788_s0 + $0x6] ss:$16 sm:%s235_s10]   ;;  %v233_v2 = vsel %vm6_vm0, %v454_v0, %v453_v62  ;;  %s253_s20 = smov 12  ;;  %v457_v5 = vld [vmem:[%s788_s0 + $0x5] ss:$16 sm:%s250_s19]   ;;  %s258_s25 = smov 48 }
  0x1a   :  { %221 = vrot.lane.b32.xlu0 %v220_v63, %s507_s16  ;;  %v456_v3 = vld [vmem:[%s788_s0 + $0x6] ss:$16 sm:%s240_s15]   ;;  %v238_v4 = vsel %vm10_vm1, %v455_v1, %v233_v2  ;;  %s263_s26 = smov 192  ;;  %s273_s2 = smov 3 }
  0x1b   :  { %v458_v6 = vld [vmem:[%s788_s0 + $0x5] ss:$16 sm:%s253_s20]   ;;  %v243_v7 = vsel %vm14_vm2, %v456_v3, %v238_v4  ;;  %s508_s3 = smov 48   ;;  %v461_v12 = vld [vmem:[%s788_s0 + $0x4] ss:$16 sm:%s273_s2]   ;;  %s276_s6 = smov 12 }
  0x1c   :  { %v256_v8 = vsel %vm6_vm0, %v458_v6, %v457_v5  ;;  %v459_v9 = vld [vmem:[%s788_s0 + $0x5] ss:$16 sm:%s258_s25]   ;;  %244 = vrot.lane.b32.xlu1 %v243_v7, %s508_s3  ;;  %s281_s7 = smov 48  ;;  %s286_s12 = smov 192 }
  0x1d   :  { %v460_v10 = vld [vmem:[%s788_s0 + $0x5] ss:$16 sm:%s263_s26]   ;;  %v261_v11 = vsel %vm10_vm1, %v459_v9, %v256_v8  ;;  %v462_v14 = vld [vmem:[%s788_s0 + $0x4] ss:$16 sm:%s276_s6]   ;;  %s509_s13 = smov 40   ;;  %s296_s16 = smov 3 }
  0x1e   :  { %v266_v13 = vsel %vm14_vm2, %v460_v10, %v261_v11  ;;  %v463_v15 = vld [vmem:[%s788_s0 + $0x4] ss:$16 sm:%s281_s7]   ;;  %v279_v16 = vsel %vm6_vm0, %v462_v14, %v461_v12  ;;  %s299_s17 = smov 12  ;;  %v465_v19 = vld [vmem:[%s788_s0 + $0x3] ss:$16 sm:%s296_s16]   ;;  %s304_s22 = smov 48 }
  0x1f   :  { %267 = vrot.lane.b32.xlu0 %v266_v13, %s509_s13  ;;  %v464_v17 = vld [vmem:[%s788_s0 + $0x4] ss:$16 sm:%s286_s12]   ;;  %v284_v18 = vsel %vm10_vm1, %v463_v15, %v279_v16  ;;  %s309_s23 = smov 192  ;;  %s319_s28 = smov 3 }
  0x20   :  { %v466_v20 = vld [vmem:[%s788_s0 + $0x3] ss:$16 sm:%s299_s17]   ;;  %v289_v21 = vsel %vm14_vm2, %v464_v17, %v284_v18  ;;  %s510_s29 = smov 32   ;;  %v469_v26 = vld [vmem:[%s788_s0 + $0x2] ss:$16 sm:%s319_s28]   ;;  %s322_s3 = smov 12 }
  0x21   :  { %v302_v22 = vsel %vm6_vm0, %v466_v20, %v465_v19  ;;  %v467_v23 = vld [vmem:[%s788_s0 + $0x3] ss:$16 sm:%s304_s22]   ;;  %290 = vrot.lane.b32.xlu1 %v289_v21, %s510_s29  ;;  %s327_s4 = smov 48  ;;  %s332_s9 = smov 192 }
  0x22   :  { %v468_v24 = vld [vmem:[%s788_s0 + $0x3] ss:$16 sm:%s309_s23]   ;;  %v307_v25 = vsel %vm10_vm1, %v467_v23, %v302_v22  ;;  %v470_v28 = vld [vmem:[%s788_s0 + $0x2] ss:$16 sm:%s322_s3]   ;;  %s511_s10 = smov 24   ;;  %s342_s13 = smov 3 }
  0x23   :  { %v312_v27 = vsel %vm14_vm2, %v468_v24, %v307_v25  ;;  %v471_v29 = vld [vmem:[%s788_s0 + $0x2] ss:$16 sm:%s327_s4]   ;;  %v325_v30 = vsel %vm6_vm0, %v470_v28, %v469_v26  ;;  %s345_s14 = smov 12  ;;  %v473_v33 = vld [vmem:[%s788_s0 + $0x1] ss:$16 sm:%s342_s13]   ;;  %s350_s19 = smov 48 }
  0x24   :  { %313 = vrot.lane.b32.xlu0 %v312_v27, %s511_s10  ;;  %v472_v31 = vld [vmem:[%s788_s0 + $0x2] ss:$16 sm:%s332_s9]   ;;  %v330_v32 = vsel %vm10_vm1, %v471_v29, %v325_v30  ;;  %s355_s20 = smov 192  ;;  %s8_s25 = smov 48 }
  0x25   :  { %v474_v34 = vld [vmem:[%s788_s0 + $0x1] ss:$16 sm:%s345_s14]   ;;  %v335_v35 = vsel %vm14_vm2, %v472_v31, %v330_v32  ;;  %s512_s26 = smov 16   ;;  %v9_v40 = vld [vmem:[%s788_s0] ss:$16 sm:%s8_s25]   ;;  %s12_s29 = smov 192 }
  0x26   :  { %v348_v36 = vsel %vm6_vm0, %v474_v34, %v473_v33  ;;  %v475_v37 = vld [vmem:[%s788_s0 + $0x1] ss:$16 sm:%s350_s19]   ;;  %336 = vrot.lane.b32.xlu1 %v335_v35, %s512_s26  ;;  %s2_s30 = smov 3  ;;  %s4_s6 = smov 12 }
  0x27   :  { %v476_v38 = vld [vmem:[%s788_s0 + $0x1] ss:$16 sm:%s355_s20]   ;;  %v353_v39 = vsel %vm10_vm1, %v475_v37, %v348_v36  ;;  %v13_v42 = vld [vmem:[%s788_s0] ss:$16 sm:%s12_s29]   ;;  %s513_s7 = smov 8  }
  0x28   :  { %v358_v41 = vsel %vm14_vm2, %v476_v38, %v353_v39  ;;  %v3_v43 = vld [vmem:[%s788_s0] ss:$16 sm:%s2_s30]  }
  0x29   :  { %359 = vrot.lane.b32.xlu0 %v358_v41, %s513_s7  ;;  %v5_v44 = vld [vmem:[%s788_s0] ss:$16 sm:%s4_s6]  }
  0x2a   :  { %v7_v45 = vsel %vm6_vm0, %v5_v44, %v3_v43  ;;  %vm315_vm0 = vcmask 261312  }
  0x2b   :  { %v11_v46 = vsel %vm10_vm1, %v9_v40, %v7_v45  ;;  %vm338_vm1 = vcmask 195712  }
  0x2c   :  { %v15_v47 = vsel %vm14_vm2, %v13_v42, %v11_v46  ;;  %vm361_vm2 = vcmask 130112  }
  0x2d   :  { %17 = vst.msk [vmem:[#allocation0] ss:$8 sm:$0xf] %vm16_vm3, %v15_v47   ;;  %18 = vst.msk [vmem:[#allocation0] ss:$8 sm:$0xf0] %vm16_vm3, %v15_v47  }
  0x78   :  { %v38_v48 = vpop.permute.xlu0 %37  }
  0x79   :  { %40 = vst.msk [vmem:[#allocation0] ss:$8 sm:$0xf] %vm39_vm4, %v38_v48   ;;  %41 = vst.msk [vmem:[#allocation0] ss:$8 sm:$0xf0] %vm39_vm4, %v38_v48  }
  0x7a   :  { %v84_v49 = vpop.permute.xlu1 %83  }
  0x7d   :  { %v61_v50 = vpop.permute.xlu0 %60  }
  0x7e   :  { %63 = vst.msk [vmem:[#allocation0] ss:$8 sm:$0xf] %vm62_vm5, %v61_v50   ;;  %64 = vst.msk [vmem:[#allocation0] ss:$8 sm:$0xf0] %vm62_vm5, %v61_v50  }
  0x7f   :  { %86 = vst.msk [vmem:[#allocation0] ss:$8 sm:$0xf] %vm85_vm6, %v84_v49   ;;  %87 = vst.msk [vmem:[#allocation0] ss:$8 sm:$0xf0] %vm85_vm6, %v84_v49   ;;  %v107_v51 = vpop.permute.xlu1 %106  }
  0x80   :  { %109 = vst.msk [vmem:[#allocation0] ss:$8 sm:$0xf] %vm108_vm7, %v107_v51   ;;  %110 = vst.msk [vmem:[#allocation0] ss:$8 sm:$0xf0] %vm108_vm7, %v107_v51  }
  0x82   :  { %v130_v52 = vpop.permute.xlu0 %129  }
  0x83   :  { %132 = vst.msk [vmem:[#allocation0] ss:$8 sm:$0xf] %vm131_vm8, %v130_v52   ;;  %133 = vst.msk [vmem:[#allocation0] ss:$8 sm:$0xf0] %vm131_vm8, %v130_v52  }
  0x84   :  { %v153_v53 = vpop.permute.xlu1 %152  }
  0x85   :  { %155 = vst.msk [vmem:[#allocation0] ss:$8 sm:$0xf] %vm154_vm9, %v153_v53   ;;  %156 = vst.msk [vmem:[#allocation0] ss:$8 sm:$0xf0] %vm154_vm9, %v153_v53  }
  0x87   :  { %v176_v54 = vpop.permute.xlu0 %175  }
  0x88   :  { %178 = vst.msk [vmem:[#allocation0] ss:$8 sm:$0xf] %vm177_vm10, %v176_v54   ;;  %179 = vst.msk [vmem:[#allocation0] ss:$8 sm:$0xf0] %vm177_vm10, %v176_v54  }
  0x89   :  { %v199_v55 = vpop.permute.xlu1 %198  }
  0x8a   :  { %201 = vst.msk [vmem:[#allocation0] ss:$8 sm:$0xf] %vm200_vm11, %v199_v55   ;;  %202 = vst.msk [vmem:[#allocation0] ss:$8 sm:$0xf0] %vm200_vm11, %v199_v55  }
  0x8c   :  { %v222_v56 = vpop.permute.xlu0 %221  }
  0x8d   :  { %224 = vst.msk [vmem:[#allocation0] ss:$8 sm:$0xf] %vm223_vm12, %v222_v56   ;;  %225 = vst.msk [vmem:[#allocation0] ss:$8 sm:$0xf0] %vm223_vm12, %v222_v56  }
  0x8e   :  { %v245_v57 = vpop.permute.xlu1 %244  }
  0x8f   :  { %247 = vst.msk [vmem:[#allocation0] ss:$8 sm:$0xf] %vm246_vm13, %v245_v57   ;;  %248 = vst.msk [vmem:[#allocation0] ss:$8 sm:$0xf0] %vm246_vm13, %v245_v57  }
  0x91   :  { %v268_v58 = vpop.permute.xlu0 %267  }
  0x92   :  { %270 = vst.msk [vmem:[#allocation0] ss:$8 sm:$0xf] %vm269_vm14, %v268_v58   ;;  %271 = vst.msk [vmem:[#allocation0] ss:$8 sm:$0xf0] %vm269_vm14, %v268_v58  }
  0x93   :  { %v291_v59 = vpop.permute.xlu1 %290  }
  0x94   :  { %293 = vst.msk [vmem:[#allocation0] ss:$8 sm:$0xf] %vm292_vm15, %v291_v59   ;;  %294 = vst.msk [vmem:[#allocation0] ss:$8 sm:$0xf0] %vm292_vm15, %v291_v59  }
  0x96   :  { %v314_v60 = vpop.permute.xlu0 %313  }
  0x97   :  { %316 = vst.msk [vmem:[#allocation0] ss:$8 sm:$0xf] %vm315_vm0, %v314_v60   ;;  %317 = vst.msk [vmem:[#allocation0] ss:$8 sm:$0xf0] %vm315_vm0, %v314_v60  }
  0x98   :  { %v337_v61 = vpop.permute.xlu1 %336  }
  0x99   :  { %339 = vst.msk [vmem:[#allocation0] ss:$8 sm:$0xf] %vm338_vm1, %v337_v61   ;;  %340 = vst.msk [vmem:[#allocation0] ss:$8 sm:$0xf0] %vm338_vm1, %v337_v61  }
  0x9b   :  { %v360_v62 = vpop.permute.xlu0 %359  }
  0x9c   :  { %362 = vst.msk [vmem:[#allocation0] ss:$8 sm:$0xf] %vm361_vm2, %v360_v62   ;;  %363 = vst.msk [vmem:[#allocation0] ss:$8 sm:$0xf0] %vm361_vm2, %v360_v62  }
  0xa3   :  { %v367_v63 = vld [vmem:[#allocation0] sm:$0x1]  ;;  %v371_v0 = vld [vmem:[#allocation0 + $0x8] sm:$0x1]  ;;  %v376_v1 = vld [vmem:[#allocation0 + $0x10] sm:$0x1] }
  0xa4   :  { %369 = vst [vmem:[%s789_s1] sm:$0x1] %v367_v63  ;;  %477 = vst [vmem:[%s789_s1 + $0x1] sm:$0x1] %v371_v0  ;;  %v382_v2 = vld [vmem:[#allocation0 + $0x18] sm:$0x1] }
  0xa5   :  { %478 = vst [vmem:[%s789_s1 + $0x2] sm:$0x1] %v376_v1  ;;  %v388_v3 = vld [vmem:[#allocation0 + $0x20] sm:$0x1]  ;;  %v394_v4 = vld [vmem:[#allocation0 + $0x28] sm:$0x1] }
  0xa6   :  { %479 = vst [vmem:[%s789_s1 + $0x3] sm:$0x1] %v382_v2  ;;  %480 = vst [vmem:[%s789_s1 + $0x4] sm:$0x1] %v388_v3  ;;  %v400_v5 = vld [vmem:[#allocation0 + $0x30] sm:$0x1] }
  0xa7   :  { %481 = vst [vmem:[%s789_s1 + $0x5] sm:$0x1] %v394_v4  ;;  %v406_v6 = vld [vmem:[#allocation0 + $0x38] sm:$0x1]  ;;  %482 = vst [vmem:[%s789_s1 + $0x6] sm:$0x1] %v400_v5 }
  0xa8   :  { %483 = vst [vmem:[%s789_s1 + $0x7] sm:$0x1] %v406_v6 }

// kernel: osy_sigmoid_constraints_util.1
= control target key start
LH: loop header
LB: loop body
LE: loop exit
PB: predicated region body
PF: predicated region fallthrough
CT: control target
= control target key end

     0   :  { %v29_v34 = vlaneseq  ;;  %s3476_s0 = inlined_call_operand.vmem [shape: f32[3,1024], index: 0, kind: input, shape index: {}]   ;;  %s3477_s1 = inlined_call_operand.vmem [shape: bf16[1024,256], index: 1, kind: input, shape index: {}]   ;;  %s3478_s2 = inlined_call_operand.vmem [shape: f32[8,1024], index: 2, kind: input, shape index: {}]   ;;  %s3479_s3 = inlined_call_operand.hbm [shape: f32[8,128], index: 3, kind: output, shape index: {}]  }
   0x1   :  { %v1741_v0 = vld [vmem:[%s3477_s1 + $0x4] ss:$8 sps:$4 sm:$0xff]   ;;  %v1745_v2 = vld [vmem:[%s3477_s1] ss:$8 sps:$4 sm:$0xff]   ;;  %v1747_v4 = vld [vmem:[%s3477_s1 + $0x14] ss:$8 sps:$4 sm:$0xff]  }
   0x2   :  { %v1743_v1 = vld [vmem:[%s3477_s1 + $0x204] ss:$8 sps:$4 sm:$0xff]   ;;  %1055 = vmatprep.subr.bf16.mxu1 %v1741_v0  ;;  %v1746_v3 = vld [vmem:[%s3477_s1 + $0x200] ss:$8 sps:$4 sm:$0xff]   ;;  %v1749_v5 = vld [vmem:[%s3477_s1 + $0x214] ss:$8 sps:$4 sm:$0xff]  }
   0x3   :  { %1301 = vmatprep.subr.bf16.mxu0 %v1743_v1  ;;  %1056 = vmatpush1.bf16.msra.mxu1 %v1745_v2  ;;  %v1751_v6 = vld [vmem:[%s3477_s1 + $0x10] ss:$8 sps:$4 sm:$0xff]   ;;  %v1753_v8 = vld [vmem:[%s3477_s1 + $0x24] ss:$8 sps:$4 sm:$0xff]   ;;  %v1757_v10 = vld [vmem:[%s3477_s1 + $0x20] ss:$8 sps:$4 sm:$0xff]  }
   0x4   :  { %1302 = vmatpush1.bf16.msra.mxu0 %v1746_v3  ;;  %1057 = vmatprep.subr.bf16.mxu1 %v1747_v4  ;;  %v1752_v7 = vld [vmem:[%s3477_s1 + $0x210] ss:$8 sps:$4 sm:$0xff]   ;;  %v1755_v9 = vld [vmem:[%s3477_s1 + $0x224] ss:$8 sps:$4 sm:$0xff]   ;;  %v1758_v11 = vld [vmem:[%s3477_s1 + $0x220] ss:$8 sps:$4 sm:$0xff]  }
   0x5   :  { %1303 = vmatprep.subr.bf16.mxu0 %v1749_v5  ;;  %v1759_v12 = vld [vmem:[%s3477_s1 + $0x34] ss:$8 sps:$4 sm:$0xff]   ;;  %v1763_v14 = vld [vmem:[%s3477_s1 + $0x30] ss:$8 sps:$4 sm:$0xff]   ;;  %v1765_v16 = vld [vmem:[%s3477_s1 + $0x44] ss:$8 sps:$4 sm:$0xff]  }
   0x6   :  { %v1761_v13 = vld [vmem:[%s3477_s1 + $0x234] ss:$8 sps:$4 sm:$0xff]   ;;  %v1764_v15 = vld [vmem:[%s3477_s1 + $0x230] ss:$8 sps:$4 sm:$0xff]   ;;  %v1767_v17 = vld [vmem:[%s3477_s1 + $0x244] ss:$8 sps:$4 sm:$0xff]  }
   0x7   :  { %1058 = vmatpush1.bf16.msra.mxu1 %v1751_v6  ;;  %v1769_v18 = vld [vmem:[%s3477_s1 + $0x40] ss:$8 sps:$4 sm:$0xff]   ;;  %v1771_v20 = vld [vmem:[%s3477_s1 + $0x54] ss:$8 sps:$4 sm:$0xff]   ;;  %v1775_v22 = vld [vmem:[%s3477_s1 + $0x50] ss:$8 sps:$4 sm:$0xff]  }
   0x8   :  { %1304 = vmatpush1.bf16.msra.mxu0 %v1752_v7  ;;  %1059 = vmatprep.subr.bf16.mxu1 %v1753_v8  ;;  %v1770_v19 = vld [vmem:[%s3477_s1 + $0x240] ss:$8 sps:$4 sm:$0xff]   ;;  %v1773_v21 = vld [vmem:[%s3477_s1 + $0x254] ss:$8 sps:$4 sm:$0xff]   ;;  %v1776_v23 = vld [vmem:[%s3477_s1 + $0x250] ss:$8 sps:$4 sm:$0xff]  }
   0x9   :  { %1305 = vmatprep.subr.bf16.mxu0 %v1755_v9  ;;  %v1777_v24 = vld [vmem:[%s3477_s1 + $0x64] ss:$8 sps:$4 sm:$0xff]   ;;  %v1781_v26 = vld [vmem:[%s3477_s1 + $0x60] ss:$8 sps:$4 sm:$0xff]   ;;  %v1783_v28 = vld [vmem:[%s3477_s1 + $0x74] ss:$8 sps:$4 sm:$0xff]  }
   0xa   :  { %v1779_v25 = vld [vmem:[%s3477_s1 + $0x264] ss:$8 sps:$4 sm:$0xff]   ;;  %v1782_v27 = vld [vmem:[%s3477_s1 + $0x260] ss:$8 sps:$4 sm:$0xff]   ;;  %v1785_v29 = vld [vmem:[%s3477_s1 + $0x274] ss:$8 sps:$4 sm:$0xff]  }
   0xb   :  { %1060 = vmatpush1.bf16.msra.mxu1 %v1757_v10  ;;  %v2171_v30 = vld [vmem:[%s3477_s1 + $0x70] ss:$8 sps:$4 sm:$0xff]   ;;  %v2181_v32 = vld [vmem:[%s3477_s1 + $0x84] ss:$8 sps:$4 sm:$0xff]   ;;  %v2191_v35 = vld [vmem:[%s3477_s1 + $0x80] ss:$8 sps:$4 sm:$0xff]  }
   0xc   :  { %1306 = vmatpush1.bf16.msra.mxu0 %v1758_v11  ;;  %1061 = vmatprep.subr.bf16.mxu1 %v1759_v12  ;;  %v2176_v31 = vld [vmem:[%s3477_s1 + $0x270] ss:$8 sps:$4 sm:$0xff]   ;;  %v2186_v33 = vld [vmem:[%s3477_s1 + $0x284] ss:$8 sps:$4 sm:$0xff]   ;;  %v2196_v36 = vld [vmem:[%s3477_s1 + $0x280] ss:$8 sps:$4 sm:$0xff]  }
   0xd   :  { %1307 = vmatprep.subr.bf16.mxu0 %v1761_v13  ;;  %v2203_v37 = vld [vmem:[%s3477_s1 + $0x94] ss:$8 sps:$4 sm:$0xff]   ;;  %v2212_v39 = vshrl.u32 %v29_v34, 7  ;;  %v2217_v40 = vld [vmem:[%s3477_s1 + $0x90] ss:$8 sps:$4 sm:$0xff]   ;;  %v21_v56 = vld [vmem:[%s3478_s2 + $0x8] sm:$0xff] }
   0xe   :  { %v2210_v38 = vld [vmem:[%s3477_s1 + $0x294] ss:$8 sps:$4 sm:$0xff]   ;;  %v2224_v41 = vld [vmem:[%s3477_s1 + $0x290] ss:$8 sps:$4 sm:$0xff]   ;;  %v2229_v42 = vld [vmem:[%s3477_s1 + $0xa4] ss:$8 sps:$4 sm:$0xff]  }
   0xf   :  { %1062 = vmatpush1.bf16.msra.mxu1 %v1763_v14  ;;  %v2236_v43 = vld [vmem:[%s3477_s1 + $0x2a4] ss:$8 sps:$4 sm:$0xff]   ;;  %v2239_v44 = vsub.s32 1, %v2212_v39  ;;  %v2244_v45 = vld [vmem:[%s3477_s1 + $0xa0] ss:$8 sps:$4 sm:$0xff]   ;;  %v2252_v47 = vsub.s32 5, %v2212_v39 }
  0x10   :  { %1308 = vmatpush1.bf16.msra.mxu0 %v1764_v15  ;;  %1063 = vmatprep.subr.bf16.mxu1 %v1765_v16  ;;  %v2249_v46 = vld [vmem:[%s3477_s1 + $0x2a0] ss:$8 sps:$4 sm:$0xff]   ;;  %v2255_v48 = vsub.s32 0, %v2212_v39  ;;  %v2262_v49 = vld [vmem:[%s3477_s1 + $0xb4] ss:$8 sps:$4 sm:$0xff]   ;;  %v2265_v50 = vsub.s32 4, %v2212_v39 }
  0x11   :  { %1309 = vmatprep.subr.bf16.mxu0 %v1767_v17  ;;  %v2272_v51 = vld [vmem:[%s3477_s1 + $0x2b4] ss:$8 sps:$4 sm:$0xff]   ;;  %v2277_v52 = vld [vmem:[%s3477_s1 + $0xb0] ss:$8 sps:$4 sm:$0xff]   ;;  %v2308_v60 = vld [vmem:[%s3477_s1 + $0xc4] ss:$8 sps:$4 sm:$0xff]  }
  0x12   :  { %v2282_v53 = vld [vmem:[%s3476_s0] ss:$4 sm:$0xff]  ;;  %v2292_v55 = vld [vmem:[%s3476_s0 + $0x1] ss:$4 sm:$0xff]  ;;  %v2342_v10 = vsub.s32 2, %v2212_v39 }
  0x13   :  { %1064 = vmatpush1.bf16.msra.mxu1 %v1769_v18  ;;  %v2287_v54 = vld [vmem:[%s3477_s1 + $0x2b0] ss:$8 sps:$4 sm:$0xff]   ;;  %v36_v57 = vrot.slane %v2282_v53, %v2239_v44  ;;  %v52_v58 = vrot.slane %v2282_v53, %v2252_v47  ;;  %v32_v59 = vrot.slane %v2282_v53, %v2255_v48  ;;  %v85_v61 = vrot.slane %v2292_v55, %v2239_v44  ;;  %v2321_v0 = vld [vmem:[%s3477_s1 + $0x2c4] ss:$8 sps:$4 sm:$0xff]   ;;  %v2329_v3 = vld [vmem:[%s3477_s1 + $0xc0] ss:$8 sps:$4 sm:$0xff]  }
  0x14   :  { %1310 = vmatpush1.bf16.msra.mxu0 %v1770_v19  ;;  %1065 = vmatprep.subr.bf16.mxu1 %v1771_v20  ;;  %v101_v62 = vrot.slane %v2292_v55, %v2252_v47  ;;  %v48_v63 = vrot.slane %v2282_v53, %v2265_v50  ;;  %v25_v2 = vld [vmem:[%s3478_s2 + $0x28] sm:$0xff]  ;;  %v81_v5 = vrot.slane %v2292_v55, %v2255_v48  ;;  %v20_v8 = vld [vmem:[%s3478_s2] sm:$0xff]  ;;  %v2354_v12 = vld [vmem:[%s3477_s1 + $0xd4] ss:$8 sps:$4 sm:$0xff]   ;;  %v2364_v18 = vsub.s32 6, %v2212_v39 }
  0x15   :  { %1311 = vmatprep.subr.bf16.mxu0 %v1773_v21  ;;  %v70_v1 = vmul.f32 %v36_v57, %v21_v56  ;;  %v74_v4 = vmul.f32 %v52_v58, %v25_v2  ;;  %v97_v6 = vrot.slane %v2292_v55, %v2265_v50  ;;  %v24_v9 = vld [vmem:[%s3478_s2 + $0x20] sm:$0xff]  ;;  %v69_v14 = vmul.f32 %v32_v59, %v20_v8  ;;  %v2361_v16 = vld [vmem:[%s3477_s1 + $0x2d4] ss:$8 sps:$4 sm:$0xff]   ;;  %v2369_v19 = vld [vmem:[%s3477_s1 + $0xd0] ss:$8 sps:$4 sm:$0xff]  }
  0x16   :  { %v2349_v11 = vld [vmem:[%s3477_s1 + $0x2c0] ss:$8 sps:$4 sm:$0xff]   ;;  %v73_v15 = vmul.f32 %v48_v63, %v24_v9  ;;  %v2392_v56 = vld [vmem:[%s3477_s1 + $0xe4] ss:$8 sps:$4 sm:$0xff]   ;;  %v2441_v8 = vld [vmem:[%s3477_s1 + $0x2f0] ss:$8 sps:$4 sm:$0xff]  }
  0x17   :  { %1066 = vmatpush1.bf16.msra.mxu1 %v1775_v22  ;;  %v119_v7 = vadd.f32 %v85_v61, %v70_v1  ;;  %v123_v13 = vadd.f32 %v101_v62, %v74_v4  ;;  %v118_v21 = vadd.f32 %v81_v5, %v69_v14  ;;  %v2397_v57 = vld [vmem:[%s3477_s1 + $0x2e4] ss:$8 sps:$4 sm:$0xff]   ;;  %v2412_v2 = vld [vmem:[%s3477_s1 + $0xe0] ss:$8 sps:$4 sm:$0xff]   ;;  %v2424_v5 = vld [vmem:[%s3477_s1 + $0xf4] ss:$8 sps:$4 sm:$0xff]  }
  0x18   :  { %1312 = vmatpush1.bf16.msra.mxu0 %v1776_v23  ;;  %1067 = vmatprep.subr.bf16.mxu1 %v1777_v24  ;;  %v122_v22 = vadd.f32 %v97_v6, %v73_v15  ;;  %v2374_v23 = vld [vmem:[%s3477_s1 + $0x2d0] ss:$8 sps:$4 sm:$0xff]   ;;  %v2417_v4 = vld [vmem:[%s3477_s1 + $0x2e0] ss:$8 sps:$4 sm:$0xff]   ;;  %v2429_v6 = vld [vmem:[%s3477_s1 + $0x2f4] ss:$8 sps:$4 sm:$0xff]  }
  0x19   :  { %1313 = vmatprep.subr.bf16.mxu0 %v1779_v25  ;;  %v127_v17 = vmin.f32 %v119_v7, 87.0  ;;  %v131_v20 = vmin.f32 %v123_v13, 87.0  ;;  %v2379_v24 = vld [vmem:[%s3476_s0 + $0x2] ss:$4 sm:$0xff]  ;;  %3611 = vst [vmem:[#allocation5_spill] sm:$0xff] %v2441_v8 }
  0x1a   :  { %v2436_v7 = vld [vmem:[%s3477_s1 + $0xf0] ss:$8 sps:$4 sm:$0xff]   ;;  %v2448_v9 = vld [vmem:[%s3477_s1 + $0x104] ss:$8 sps:$4 sm:$0xff]  }
  0x1b   :  { %1068 = vmatpush1.bf16.msra.mxu1 %v1781_v26  ;;  %v136_v25 = vmul.f32 1.442695, %v127_v17  ;;  %v2453_v13 = vld [vmem:[%s3477_s1 + $0x304] ss:$8 sps:$4 sm:$0xff]  }
  0x1c   :  { %1314 = vmatpush1.bf16.msra.mxu0 %v1782_v27  ;;  %1069 = vmatprep.subr.bf16.mxu1 %v1783_v28  ;;  %v144_v27 = vmul.f32 1.442695, %v131_v20  ;;  %v126_v28 = vmin.f32 %v118_v21, 87.0  ;;  %3612 = vst [vmem:[#allocation6_spill] sm:$0xff] %v2453_v13 }
  0x1d   :  { %1315 = vmatprep.subr.bf16.mxu0 %v1785_v29  ;;  %v130_v29 = vmin.f32 %v122_v22, 87.0  ;;  %1933 = vpow2.f32 %v136_v25 }
  0x1e   :  { %1935 = vpow2.f32 %v144_v27  ;;  %v134_v61 = vmul.f32 1.442695, %v126_v28  ;;  %v158_v28 = vrot.slane %v2379_v24, %v2239_v44 }
  0x1f   :  { %1070 = vmatpush1.bf16.msra.mxu1 %v2171_v30  ;;  %v142_v62 = vmul.f32 1.442695, %v130_v29  ;;  %v174_v29 = vrot.slane %v2379_v24, %v2252_v47 }
  0x20   :  { %1316 = vmatpush1.bf16.msra.mxu0 %v2176_v31  ;;  %1071 = vmatprep.subr.bf16.mxu1 %v2181_v32  ;;  %1937 = vpow2.f32 %v134_v61  ;;  %v154_v61 = vrot.slane %v2379_v24, %v2255_v48  ;;  %vm192_vm0 = vcmp.gt.f32.partialorder %v158_v28, 0.5 }
  0x21   :  { %1317 = vmatprep.subr.bf16.mxu0 %v2186_v33  ;;  %1939 = vpow2.f32 %v142_v62  ;;  %vm196_vm1 = vcmp.gt.f32.partialorder %v174_v29, 0.5  ;;  %v2474_v29 = vsub.s32 7, %v2212_v39 }
  0x22   :  { %vm191_vm2 = vcmp.gt.f32.partialorder %v154_v61, 0.5 }
  0x23   :  { %1072 = vmatpush1.bf16.msra.mxu1 %v2191_v35 }
  0x24   :  { %1318 = vmatpush1.bf16.msra.mxu0 %v2196_v36  ;;  %1073 = vmatprep.subr.bf16.mxu1 %v2203_v37 }
  0x25   :  { %1319 = vmatprep.subr.bf16.mxu0 %v2210_v38 }
  0x27   :  { %1074 = vmatpush1.bf16.msra.mxu1 %v2217_v40  ;;  %v1934_v14 = vpop.eup %1933 }
  0x28   :  { %1320 = vmatpush1.bf16.msra.mxu0 %v2224_v41  ;;  %1075 = vmatprep.subr.bf16.mxu1 %v2229_v42  ;;  %v1936_v15 = vpop.eup %1935  ;;  %v200_v17 = vadd.f32 1.0, %v1934_v14 }
  0x29   :  { %1321 = vmatprep.subr.bf16.mxu0 %v2236_v43  ;;  %v204_v20 = vadd.f32 1.0, %v1936_v15 }
  0x2a   :  { %v1938_v21 = vpop.eup %1937  ;;  %1941 = vlog2.f32 %v200_v17  ;;  %v170_v17 = vrot.slane %v2379_v24, %v2265_v50  ;;  %v2471_v50 = vsub.s32 3, %v2212_v39 }
  0x2b   :  { %1076 = vmatpush1.bf16.msra.mxu1 %v2244_v45  ;;  %v1940_v22 = vpop.eup %1939  ;;  %1943 = vlog2.f32 %v204_v20  ;;  %v199_v25 = vadd.f32 1.0, %v1938_v21 }
  0x2c   :  { %1322 = vmatpush1.bf16.msra.mxu0 %v2249_v46  ;;  %1077 = vmatprep.subr.bf16.mxu1 %v2262_v49  ;;  %v203_v27 = vadd.f32 1.0, %v1940_v22  ;;  %vm195_vm3 = vcmp.gt.f32.partialorder %v170_v17, 0.5 }
  0x2d   :  { %1323 = vmatprep.subr.bf16.mxu0 %v2272_v51  ;;  %1945 = vlog2.f32 %v199_v25 }
  0x2e   :  { %1947 = vlog2.f32 %v203_v27 }
  0x2f   :  { %1078 = vmatpush1.bf16.msra.mxu1 %v2277_v52 }
  0x30   :  { %1324 = vmatpush1.bf16.msra.mxu0 %v2287_v54  ;;  %1079 = vmatprep.subr.bf16.mxu1 %v2308_v60 }
  0x31   :  { %1325 = vmatprep.subr.bf16.mxu0 %v2321_v0 }
  0x33   :  { %1080 = vmatpush1.bf16.msra.mxu1 %v2329_v3 }
  0x34   :  { %1326 = vmatpush1.bf16.msra.mxu0 %v2349_v11  ;;  %1081 = vmatprep.subr.bf16.mxu1 %v2354_v12  ;;  %v1942_v62 = vpop.eup %1941 }
  0x35   :  { %1327 = vmatprep.subr.bf16.mxu0 %v2361_v16  ;;  %v1944_v1 = vpop.eup %1943  ;;  %v210_v20 = vmul.f32 0.6931472, %v1942_v62 }
  0x36   :  { %v218_v58 = vmul.f32 0.6931472, %v1944_v1 }
  0x37   :  { %1082 = vmatpush1.bf16.msra.mxu1 %v2369_v19  ;;  %v1946_v25 = vpop.eup %1945  ;;  %v224_v27 = vsel %vm192_vm0, %v1934_v14, %v210_v20  ;;  %v2479_v14 = vld [vmem:[%s3477_s1 + $0x300] ss:$8 sps:$4 sm:$0xff]   ;;  %v60_v20 = vrot.slane %v2282_v53, %v2474_v29 }
  0x38   :  { %1328 = vmatpush1.bf16.msra.mxu0 %v2374_v23  ;;  %1083 = vmatprep.subr.bf16.mxu1 %v2392_v56  ;;  %v1948_v63 = vpop.eup %1947  ;;  %v2467_v44 = vpack.c.bf16 %v224_v27, %v224_v27  ;;  %v228_v34 = vsel %vm196_vm1, %v1936_v15, %v218_v58  ;;  %v208_v47 = vmul.f32 0.6931472, %v1946_v25  ;;  %3614 = vst [vmem:[#allocation8_spill] sm:$0xff] %v2479_v14  ;;  %v2504_v25 = vld [vmem:[%s3477_s1 + $0x100] ss:$8 sps:$4 sm:$0xff]  }
  0x39   :  { %1329 = vmatprep.subr.bf16.mxu0 %v2397_v57  ;;  %v364_v59 = vpack.c.bf16 %v228_v34, %v228_v34  ;;  %v216_v48 = vmul.f32 0.6931472, %v1948_v63 }
  0x3a   :  { %3613 = vst [vmem:[#allocation7_spill] sm:$0xff] %v2467_v44  ;;  %v368_v28 = vunpack.c.l.bf16 %v2467_v44  ;;  %v223_v26 = vsel %vm191_vm2, %v1938_v21, %v208_v47  ;;  %v2488_v21 = vld [vmem:[%s3477_s1 + $0x314] ss:$8 sps:$4 sm:$0xff]  }
  0x3b   :  { %1084 = vmatpush1.bf16.msra.mxu1 %v2412_v2  ;;  %v372_v1 = vunpack.c.l.bf16 %v364_v59  ;;  %1333 = vmatprep.mubr.bf16.mxu0 %v364_v59  ;;  %v2481_v58 = vpack.c.bf16 %v223_v26, %v223_v26  ;;  %v227_v15 = vsel %vm195_vm3, %v1940_v22, %v216_v48  ;;  %3616 = vst [vmem:[#allocation10_spill] sm:$0xff] %v2488_v21  ;;  %v2518_v48 = vld [vmem:[%s3477_s1 + $0x114] ss:$8 sps:$4 sm:$0xff]  }
  0x3c   :  { %1330 = vmatpush1.bf16.msra.mxu0 %v2417_v4  ;;  %1085 = vmatprep.subr.bf16.mxu1 %v2424_v5  ;;  %v2483_v63 = vsub.f32 %v224_v27, %v368_v28  ;;  %v363_v61 = vpack.c.bf16 %v227_v15, %v227_v15  ;;  %v44_v22 = vrot.slane %v2282_v53, %v2471_v50  ;;  %v2510_v27 = vld [vmem:[%s3477_s1 + $0x310] ss:$8 sps:$4 sm:$0xff]  }
  0x3d   :  { %1331 = vmatprep.subr.bf16.mxu0 %v2429_v6  ;;  %3615 = vst [vmem:[#allocation9_spill] sm:$0xff] %v2481_v58  ;;  %v2490_v39 = vsub.f32 %v228_v34, %v372_v1  ;;  %v367_v59 = vunpack.c.l.bf16 %v2481_v58  ;;  %3617 = vst [vmem:[#allocation11_spill] sm:$0xff] %v2510_v27  ;;  %v93_v28 = vrot.slane %v2292_v55, %v2471_v50 }
  0x3e   :  { %v2495_v62 = vpack.c.bf16 %v2483_v63, %v2483_v63  ;;  %v371_v17 = vunpack.c.l.bf16 %v363_v61  ;;  %v109_v1 = vrot.slane %v2292_v55, %v2474_v29 }
  0x3f   :  { %1086 = vmatpush1.bf16.msra.mxu1 %v2436_v7  ;;  %v375_v34 = vsub.f32 %v223_v26, %v367_v59  ;;  %v2524_v26 = vld [vmem:[%s3477_s1 + $0x324] ss:$8 sps:$4 sm:$0xff]   ;;  %v27_v59 = vld [vmem:[%s3478_s2 + $0x38] sm:$0xff] }
  0x40   :  { %1332 = vmatpush1.bf16.msra.mxu0 %v2441_v8  ;;  %1096 = vmatprep.subr.bf16.mxu1 %v2448_v9  ;;  %v2513_v47 = vsub.f32 %v227_v15, %v371_v17  ;;  %3619 = vst [vmem:[#allocation13_spill] sm:$0xff] %v2524_v26  ;;  %v22_v17 = vld [vmem:[%s3478_s2 + $0x10] sm:$0xff]  ;;  %v76_v44 = vmul.f32 %v60_v20, %v27_v59 }
  0x41   :  { %1342 = vmatprep.subr.bf16.mxu0 %v2453_v13  ;;  %1087 = vmatprep.mubr.bf16.mxu1 %v2495_v62  ;;  %v383_v15 = vpack.c.bf16 %v375_v34, %v375_v34  ;;  %v26_v13 = vld [vmem:[%s3478_s2 + $0x30] sm:$0xff] }
  0x42   :  { %3618 = vst [vmem:[#allocation12_spill] sm:$0xff] %v2513_v47 }
  0x43   :  { %1334 = vmatmul.mubr.bf16.vlgmr.msra.gmra.mrb[0].mxu0 %v363_v61  ;;  %v23_v61 = vld [vmem:[%s3478_s2 + $0x18] sm:$0xff] }
  0x44   :  { %1343 = vmatpush1.bf16.msra.mxu0 %v2479_v14  ;;  %v72_v58 = vmul.f32 %v44_v22, %v23_v61 }
  0x45   :  { %1344 = vmatprep.subr.bf16.mxu0 %v2488_v21  ;;  %v3620_v21 = vrot.slane %v2282_v53, %v2342_v10 }
  0x47   :  { %v71_v14 = vmul.f32 %v3620_v21, %v22_v17 }
  0x48   :  { %8 = vsyncpa [#allocation3], 0  ;;  %v391_v8 = vunpack.c.l.bf16 %v383_v15  ;;  %1088 = vmatmul.mubr.bf16.vlgmr.msra.gmra.mrb[0].mxu1 %v383_v15  ;;  %1345 = vmatpush1.bf16.msra.mxu0 %v2510_v27  ;;  %v2549_v47 = vld [vmem:[%s3477_s1 + $0x320] ss:$8 sps:$4 sm:$0xff]   ;;  %v3622_v22 = vrot.slane %v2282_v53, %v2364_v18  ;;  %v2558_v21 = vld [vmem:[%s3477_s1 + $0x110] ss:$8 sps:$4 sm:$0xff]   ;;  %v121_v61 = vadd.f32 %v93_v28, %v72_v58  ;;  %v125_v59 = vadd.f32 %v109_v1, %v76_v44 }
  0x49   :  { %3621 = vst [vmem:[#allocation14_spill] sm:$0xff] %v2549_v47  ;;  %1097 = vmatpush1.bf16.msra.mxu1 %v2504_v25  ;;  %1346 = vmatprep.subr.bf16.mxu0 %v2524_v26  ;;  %v2564_v15 = vld [vmem:[%s3477_s1 + $0x334] ss:$8 sps:$4 sm:$0xff]   ;;  %v3624_v53 = vrot.slane %v2292_v55, %v2342_v10  ;;  %v2573_v17 = vld [vmem:[%s3477_s1 + $0x124] ss:$8 sps:$4 sm:$0xff]  }
  0x4a   :  { %v75_v20 = vmul.f32 %v3622_v22, %v26_v13  ;;  %3623 = vst [vmem:[#allocation15_spill] sm:$0xff] %v2564_v15  ;;  %1098 = vmatprep.subr.bf16.mxu1 %v2518_v48  ;;  %v3625_v22 = vrot.slane %v2292_v55, %v2364_v18  ;;  %v2578_v27 = vsub.f32 %v375_v34, %v391_v8  ;;  %v2583_v44 = vld [vmem:[%s3477_s1 + $0x120] ss:$8 sps:$4 sm:$0xff]   ;;  %v129_v58 = vmin.f32 %v121_v61, 87.0  ;;  %v2589_v1 = vld [vmem:[%s3477_s1 + $0x330] ss:$8 sps:$4 sm:$0xff]  }
  0x4b   :  { %v120_v13 = vadd.f32 %v3624_v53, %v71_v14  ;;  %v133_v14 = vmin.f32 %v125_v59, 87.0  ;;  %3626 = vst [vmem:[#allocation16_spill] sm:$0xff] %v2589_v1  ;;  %v2594_v55 = vld [vmem:[%s3477_s1 + $0x344] ss:$8 sps:$4 sm:$0xff]   ;;  %v2602_v59 = vld [vmem:[%s3477_s1 + $0x134] ss:$8 sps:$4 sm:$0xff]  }
  0x4c   :  { %v124_v26 = vadd.f32 %v3625_v22, %v75_v20  ;;  %1347 = vmatpush1.bf16.msra.mxu0 %v2549_v47  ;;  %3627 = vst [vmem:[#allocation17_spill] sm:$0xff] %v2594_v55  ;;  %v140_v34 = vmul.f32 1.442695, %v129_v58  ;;  %3628 = vst [vmem:[#allocation18_spill] sm:$0xff] %v2602_v59  ;;  %v2620_v22 = vld [vmem:[%s3477_s1 + $0x354] ss:$8 sps:$4 sm:$0xff]  }
  0x4d   :  { %v128_v28 = vmin.f32 %v120_v13, 87.0  ;;  %1099 = vmatpush1.bf16.msra.mxu1 %v2558_v21  ;;  %1348 = vmatprep.subr.bf16.mxu0 %v2564_v15  ;;  %v148_v20 = vmul.f32 1.442695, %v133_v14  ;;  %v2614_v13 = vld [vmem:[%s3477_s1 + $0x130] ss:$8 sps:$4 sm:$0xff]   ;;  %3631 = vst [vmem:[#allocation21_spill] sm:$0xff] %v2620_v22 }
  0x4e   :  { %v132_v8 = vmin.f32 %v124_v26, 87.0  ;;  %1100 = vmatprep.subr.bf16.mxu1 %v2573_v17  ;;  %1949 = vpow2.f32 %v140_v34  ;;  %v2608_v26 = vld [vmem:[%s3477_s1 + $0x340] ss:$8 sps:$4 sm:$0xff]   ;;  %3630 = vst [vmem:[#allocation20_spill] sm:$0xff] %v2614_v13  ;;  %v2626_v58 = vld [vmem:[%s3477_s1 + $0x144] ss:$8 sps:$4 sm:$0xff]  }
  0x4f   :  { %v138_v61 = vmul.f32 1.442695, %v128_v28  ;;  %3629 = vst [vmem:[#allocation19_spill] sm:$0xff] %v2608_v26  ;;  %1951 = vpow2.f32 %v148_v20  ;;  %3632 = vst [vmem:[#allocation22_spill] sm:$0xff] %v2626_v58  ;;  %v2632_v14 = vld [vmem:[%s3477_s1 + $0x350] ss:$8 sps:$4 sm:$0xff]  }
  0x50   :  { %v146_v53 = vmul.f32 1.442695, %v132_v8  ;;  %1349 = vmatpush1.bf16.msra.mxu0 %v2589_v1  ;;  %3633 = vst [vmem:[#allocation23_spill] sm:$0xff] %v2632_v14  ;;  %v2638_v28 = vld [vmem:[%s3477_s1 + $0x140] ss:$8 sps:$4 sm:$0xff]  }
  0x51   :  { %1101 = vmatpush1.bf16.msra.mxu1 %v2583_v44  ;;  %1350 = vmatprep.subr.bf16.mxu0 %v2594_v55  ;;  %1953 = vpow2.f32 %v138_v61  ;;  %3634 = vst [vmem:[#allocation24_spill] sm:$0xff] %v2638_v28  ;;  %v2644_v8 = vld [vmem:[%s3477_s1 + $0x364] ss:$8 sps:$4 sm:$0xff]   ;;  %v2650_v34 = vld [vmem:[%s3477_s1 + $0x154] ss:$8 sps:$4 sm:$0xff]  }
  0x52   :  { %1102 = vmatprep.subr.bf16.mxu1 %v2602_v59  ;;  %1955 = vpow2.f32 %v146_v53  ;;  %3635 = vst [vmem:[#allocation25_spill] sm:$0xff] %v2644_v8  ;;  %3636 = vst [vmem:[#allocation26_spill] sm:$0xff] %v2650_v34  ;;  %v2656_v20 = vld [vmem:[%s3477_s1 + $0x360] ss:$8 sps:$4 sm:$0xff]   ;;  %v2662_v53 = vld [vmem:[%s3477_s1 + $0x150] ss:$8 sps:$4 sm:$0xff]   ;;  %v3656_v59 = vrot.slane %v2379_v24, %v2342_v10 }
  0x53   :  { %3637 = vst [vmem:[#allocation27_spill] sm:$0xff] %v2656_v20  ;;  %3638 = vst [vmem:[#allocation28_spill] sm:$0xff] %v2662_v53  ;;  %v2782_v10 = vld [vmem:[%s3477_s1 + $0x3b4] ss:$8 sps:$4 sm:$0xff]  }
  0x54   :  { %1351 = vmatpush1.bf16.msra.mxu0 %v2608_v26  ;;  %v2674_v26 = vld [vmem:[%s3477_s1 + $0x164] ss:$8 sps:$4 sm:$0xff]   ;;  %vm193_vm6 = vcmp.gt.f32.partialorder %v3656_v59, 0.5  ;;  %3661 = vst [vmem:[#allocation45_spill] sm:$0xff] %v2782_v10 }
  0x55   :  { %1103 = vmatpush1.bf16.msra.mxu1 %v2614_v13  ;;  %1352 = vmatprep.subr.bf16.mxu0 %v2620_v22  ;;  %v2668_v22 = vld [vmem:[%s3477_s1 + $0x374] ss:$8 sps:$4 sm:$0xff]   ;;  %3640 = vst [vmem:[#allocation30_spill] sm:$0xff] %v2674_v26  ;;  %v2760_v13 = vld [vmem:[%s3477_s1 + $0x3a0] ss:$8 sps:$4 sm:$0xff]  }
  0x56   :  { %1104 = vmatprep.subr.bf16.mxu1 %v2626_v58  ;;  %3639 = vst [vmem:[#allocation29_spill] sm:$0xff] %v2668_v22  ;;  %3655 = vst [vmem:[#allocation43_spill] sm:$0xff] %v2760_v13  ;;  %v2788_v59 = vld [vmem:[%s3477_s1 + $0x1a4] ss:$8 sps:$4 sm:$0xff]  }
  0x57   :  { %3662 = vst [vmem:[#allocation46_spill] sm:$0xff] %v2788_v59 }
  0x58   :  { %1353 = vmatpush1.bf16.msra.mxu0 %v2632_v14  ;;  %v1950_v61 = vpop.eup %1949 }
  0x59   :  { %1105 = vmatpush1.bf16.msra.mxu1 %v2638_v28  ;;  %1354 = vmatprep.subr.bf16.mxu0 %v2644_v8  ;;  %v1952_v14 = vpop.eup %1951  ;;  %v202_v55 = vadd.f32 1.0, %v1950_v61  ;;  %v2680_v8 = vld [vmem:[%s3477_s1 + $0x370] ss:$8 sps:$4 sm:$0xff]  }
  0x5a   :  { %1106 = vmatprep.subr.bf16.mxu1 %v2650_v34  ;;  %v206_v28 = vadd.f32 1.0, %v1952_v14  ;;  %3641 = vst [vmem:[#allocation31_spill] sm:$0xff] %v2680_v8  ;;  %v2686_v34 = vld [vmem:[%s3477_s1 + $0x160] ss:$8 sps:$4 sm:$0xff]  }
  0x5b   :  { %v1954_v1 = vpop.eup %1953  ;;  %1957 = vlog2.f32 %v202_v55  ;;  %3642 = vst [vmem:[#allocation32_spill] sm:$0xff] %v2686_v34  ;;  %v2698_v55 = vld [vmem:[%s3477_s1 + $0x174] ss:$8 sps:$4 sm:$0xff]  }
  0x5c   :  { %v1956_v15 = vpop.eup %1955  ;;  %1355 = vmatpush1.bf16.msra.mxu0 %v2656_v20  ;;  %v201_v58 = vadd.f32 1.0, %v1954_v1  ;;  %v2692_v20 = vld [vmem:[%s3477_s1 + $0x384] ss:$8 sps:$4 sm:$0xff]   ;;  %1959 = vlog2.f32 %v206_v28  ;;  %3644 = vst [vmem:[#allocation34_spill] sm:$0xff] %v2698_v55  ;;  %v2710_v28 = vld [vmem:[%s3477_s1 + $0x170] ss:$8 sps:$4 sm:$0xff]  }
  0x5d   :  { %1107 = vmatpush1.bf16.msra.mxu1 %v2662_v53  ;;  %1356 = vmatprep.subr.bf16.mxu0 %v2668_v22  ;;  %3643 = vst [vmem:[#allocation33_spill] sm:$0xff] %v2692_v20  ;;  %v205_v47 = vadd.f32 1.0, %v1956_v15  ;;  %v2704_v22 = vld [vmem:[%s3477_s1 + $0x380] ss:$8 sps:$4 sm:$0xff]   ;;  %3646 = vst [vmem:[#allocation36_spill] sm:$0xff] %v2710_v28 }
  0x5e   :  { %1108 = vmatprep.subr.bf16.mxu1 %v2674_v26  ;;  %1961 = vlog2.f32 %v201_v58  ;;  %3645 = vst [vmem:[#allocation35_spill] sm:$0xff] %v2704_v22  ;;  %v2722_v58 = vld [vmem:[%s3477_s1 + $0x184] ss:$8 sps:$4 sm:$0xff]  }
  0x5f   :  { %1963 = vlog2.f32 %v205_v47  ;;  %v2716_v47 = vld [vmem:[%s3477_s1 + $0x394] ss:$8 sps:$4 sm:$0xff]   ;;  %3648 = vst [vmem:[#allocation38_spill] sm:$0xff] %v2722_v58 }
  0x60   :  { %1357 = vmatpush1.bf16.msra.mxu0 %v2680_v8  ;;  %3647 = vst [vmem:[#allocation37_spill] sm:$0xff] %v2716_v47  ;;  %v166_v8 = vrot.slane %v2379_v24, %v2471_v50  ;;  %v2744_v50 = vld [vmem:[%s3477_s1 + $0x3a4] ss:$8 sps:$4 sm:$0xff]  }
  0x61   :  { %1109 = vmatpush1.bf16.msra.mxu1 %v2686_v34  ;;  %1358 = vmatprep.subr.bf16.mxu0 %v2692_v20  ;;  %v182_v34 = vrot.slane %v2379_v24, %v2474_v29  ;;  %v2732_v20 = vld [vmem:[%s3477_s1 + $0x390] ss:$8 sps:$4 sm:$0xff]   ;;  %3651 = vst [vmem:[#allocation41_spill] sm:$0xff] %v2744_v50 }
  0x62   :  { %1110 = vmatprep.subr.bf16.mxu1 %v2698_v55  ;;  %3649 = vst [vmem:[#allocation39_spill] sm:$0xff] %v2732_v20  ;;  %v2738_v55 = vld [vmem:[%s3477_s1 + $0x180] ss:$8 sps:$4 sm:$0xff]   ;;  %vm194_vm4 = vcmp.gt.f32.partialorder %v166_v8, 0.5  ;;  %v3657_v8 = vrot.slane %v2379_v24, %v2364_v18 }
  0x63   :  { %3650 = vst [vmem:[#allocation40_spill] sm:$0xff] %v2738_v55  ;;  %vm2752_vm5 = vcmp.gt.f32.partialorder %v182_v34, 0.5 }
  0x64   :  { %1359 = vmatpush1.bf16.msra.mxu0 %v2704_v22  ;;  %v2750_v22 = vld [vmem:[%s3477_s1 + $0x194] ss:$8 sps:$4 sm:$0xff]   ;;  %vm2768_vm7 = vcmp.gt.f32.partialorder %v3657_v8, 0.5 }
  0x65   :  { %1111 = vmatpush1.bf16.msra.mxu1 %v2710_v28  ;;  %1360 = vmatprep.subr.bf16.mxu0 %v2716_v47  ;;  %v1958_v29 = vpop.eup %1957  ;;  %3652 = vst [vmem:[#allocation42_spill] sm:$0xff] %v2750_v22 }
  0x66   :  { %1112 = vmatprep.subr.bf16.mxu1 %v2722_v58  ;;  %v1960_v28 = vpop.eup %1959  ;;  %v214_v26 = vmul.f32 0.6931472, %v1958_v29 }
  0x67   :  { %v222_v58 = vmul.f32 0.6931472, %v1960_v28 }
  0x68   :  { %v1962_v47 = vpop.eup %1961  ;;  %1361 = vmatpush1.bf16.msra.mxu0 %v2732_v20  ;;  %v2776_v20 = vld [vmem:[%s3477_s1 + $0x190] ss:$8 sps:$4 sm:$0xff]   ;;  %v226_v18 = vsel %vm194_vm4, %v1950_v61, %v214_v26 }
  0x69   :  { %v1964_v29 = vpop.eup %1963  ;;  %1113 = vmatpush1.bf16.msra.mxu1 %v2738_v55  ;;  %3660 = vst [vmem:[#allocation44_spill] sm:$0xff] %v2776_v20  ;;  %1362 = vmatprep.subr.bf16.mxu0 %v2744_v50  ;;  %v212_v24 = vmul.f32 0.6931472, %v1962_v47  ;;  %v2790_v28 = vpack.c.bf16 %v226_v18, %v226_v18  ;;  %v2794_v8 = vsel %vm2752_vm5, %v1952_v14, %v222_v58  ;;  %v2804_v61 = vld [vmem:[%s3477_s1 + $0x3b0] ss:$8 sps:$4 sm:$0xff]  }
  0x6a   :  { %1114 = vmatprep.subr.bf16.mxu1 %v2750_v22  ;;  %v220_v50 = vmul.f32 0.6931472, %v1964_v29  ;;  %v2798_v55 = vpack.c.bf16 %v2794_v8, %v2794_v8  ;;  %3664 = vst [vmem:[#allocation48_spill] sm:$0xff] %v2804_v61  ;;  %v2815_v14 = vld [vmem:[%s3477_s1 + $0x1a0] ss:$8 sps:$4 sm:$0xff]  }
  0x6b   :  { %3663 = vst [vmem:[#allocation47_spill] sm:$0xff] %v2790_v28  ;;  %v225_v26 = vsel %vm193_vm6, %v1954_v1, %v212_v24  ;;  %v370_v47 = vunpack.c.l.bf16 %v2790_v28  ;;  %3665 = vst [vmem:[#allocation49_spill] sm:$0xff] %v2815_v14  ;;  %v2821_v1 = vld [vmem:[%s3477_s1 + $0x3c4] ss:$8 sps:$4 sm:$0xff]   ;;  %v2840_v29 = vld [vmem:[%s3477_s1 + $0x1b0] ss:$8 sps:$4 sm:$0xff]  }
  0x6c   :  { %1363 = vmatpush1.bf16.msra.mxu0 %v2760_v13  ;;  %v2809_v53 = vsel %vm2768_vm7, %v1956_v15, %v220_v50  ;;  %3666 = vst [vmem:[#allocation50_spill] sm:$0xff] %v2821_v1  ;;  %v2827_v15 = vld [vmem:[%s3477_s1 + $0x1b4] ss:$8 sps:$4 sm:$0xff]   ;;  %1374 = vmatprep.mubr.bf16.mxu0 %v2798_v55  ;;  %v2834_v50 = vld [vmem:[%s3477_s1 + $0x3c0] ss:$8 sps:$4 sm:$0xff]   ;;  %3669 = vst [vmem:[#allocation53_spill] sm:$0xff] %v2840_v29  ;;  %v392_v13 = vunpack.c.l.bf16 %v2495_v62 }
  0x6d   :  { %1115 = vmatpush1.bf16.msra.mxu1 %v2776_v20  ;;  %1364 = vmatprep.subr.bf16.mxu0 %v2782_v10  ;;  %3667 = vst [vmem:[#allocation51_spill] sm:$0xff] %v2827_v15  ;;  %v378_v58 = vsub.f32 %v226_v18, %v370_v47  ;;  %3668 = vst [vmem:[#allocation52_spill] sm:$0xff] %v2834_v50  ;;  %v2846_v18 = vld [vmem:[%s3477_s1 + $0x3d4] ss:$8 sps:$4 sm:$0xff]   ;;  %v2852_v24 = vld [vmem:[%s3477_s1 + $0x1c4] ss:$8 sps:$4 sm:$0xff]   ;;  %v2854_v47 = vpack.c.bf16 %v225_v26, %v225_v26 }
  0x6e   :  { %1116 = vmatprep.subr.bf16.mxu1 %v2788_v59  ;;  %3670 = vst [vmem:[#allocation54_spill] sm:$0xff] %v2846_v18  ;;  %3671 = vst [vmem:[#allocation55_spill] sm:$0xff] %v2852_v24  ;;  %v2860_v28 = vld [vmem:[%s3477_s1 + $0x3d0] ss:$8 sps:$4 sm:$0xff]   ;;  %v2898_v62 = vld [vmem:[%s3477_s1 + $0x3f4] ss:$8 sps:$4 sm:$0xff]  }
  0x6f   :  { %v386_v34 = vpack.c.bf16 %v378_v58, %v378_v58  ;;  %3672 = vst [vmem:[#allocation56_spill] sm:$0xff] %v2854_v47  ;;  %3673 = vst [vmem:[#allocation57_spill] sm:$0xff] %v2860_v28  ;;  %v369_v10 = vunpack.c.l.bf16 %v2854_v47  ;;  %v2904_v47 = vld [vmem:[%s3477_s1 + $0x1e4] ss:$8 sps:$4 sm:$0xff]  }
  0x70   :  { %1365 = vmatpush1.bf16.msra.mxu0 %v2804_v61  ;;  %v2872_v61 = vld [vmem:[%s3477_s1 + $0x3e4] ss:$8 sps:$4 sm:$0xff]   ;;  %3679 = vst [vmem:[#allocation63_spill] sm:$0xff] %v2898_v62  ;;  %3680 = vst [vmem:[#allocation64_spill] sm:$0xff] %v2904_v47 }
  0x71   :  { %1117 = vmatpush1.bf16.msra.mxu1 %v2815_v14  ;;  %1366 = vmatprep.subr.bf16.mxu0 %v2821_v1  ;;  %v2866_v1 = vld [vmem:[%s3477_s1 + $0x1c0] ss:$8 sps:$4 sm:$0xff]   ;;  %3675 = vst [vmem:[#allocation59_spill] sm:$0xff] %v2872_v61 }
  0x72   :  { %1118 = vmatprep.subr.bf16.mxu1 %v2827_v15  ;;  %1128 = vmatprep.mubr.bf16.mxu1 %v386_v34  ;;  %3674 = vst [vmem:[#allocation58_spill] sm:$0xff] %v2866_v1 }
  0x74   :  { %1367 = vmatpush1.bf16.msra.mxu0 %v2834_v50  ;;  %v2878_v50 = vld [vmem:[%s3477_s1 + $0x1d4] ss:$8 sps:$4 sm:$0xff]  }
  0x75   :  { %1119 = vmatpush1.bf16.msra.mxu1 %v2840_v29  ;;  %1368 = vmatprep.subr.bf16.mxu0 %v2846_v18  ;;  %3676 = vst [vmem:[#allocation60_spill] sm:$0xff] %v2878_v50  ;;  %v2886_v18 = vld [vmem:[%s3477_s1 + $0x3e0] ss:$8 sps:$4 sm:$0xff]  }
  0x76   :  { %1120 = vmatprep.subr.bf16.mxu1 %v2852_v24  ;;  %3677 = vst [vmem:[#allocation61_spill] sm:$0xff] %v2886_v18  ;;  %v2892_v24 = vld [vmem:[%s3477_s1 + $0x1d0] ss:$8 sps:$4 sm:$0xff]  }
  0x77   :  { %3678 = vst [vmem:[#allocation62_spill] sm:$0xff] %v2892_v24 }
  0x78   :  { %1369 = vmatpush1.bf16.msra.mxu0 %v2860_v28  ;;  %v377_v28 = vsub.f32 %v225_v26, %v369_v10  ;;  %v2924_v10 = vld [vmem:[%s3477_s1 + $0x1f4] ss:$8 sps:$4 sm:$0xff]  }
  0x79   :  { %1121 = vmatpush1.bf16.msra.mxu1 %v2866_v1  ;;  %1370 = vmatprep.subr.bf16.mxu0 %v2872_v61  ;;  %v2910_v1 = vld [vmem:[%s3477_s1 + $0x3f0] ss:$8 sps:$4 sm:$0xff]   ;;  %v400_v61 = vsub.f32 %v2483_v63, %v392_v13  ;;  %3682 = vst [vmem:[#allocation66_spill] sm:$0xff] %v2924_v10  ;;  %v365_v63 = vpack.c.bf16 %v2809_v53, %v2809_v53  ;;  %v394_v13 = vunpack.c.l.bf16 %v386_v34 }
  0x7a   :  { %1122 = vmatprep.subr.bf16.mxu1 %v2878_v50  ;;  %3681 = vst [vmem:[#allocation65_spill] sm:$0xff] %v2910_v1  ;;  %v2917_v50 = vld [vmem:[%s3477_s1 + $0x1e0] ss:$8 sps:$4 sm:$0xff]   ;;  %v385_v26 = vpack.c.bf16 %v377_v28, %v377_v28 }
  0x7b   :  { %v2952_v34 = vsub.f32 %v378_v58, %v394_v13  ;;  %v2974_v58 = vpack.c.bf16 %v2490_v39, %v2490_v39  ;;  %v3022_v13 = vld [vmem:[%s3477_s1 + $0x224] ss:$8 sps:$4 sm:$0xff]  }
  0x7c   :  { %1371 = vmatpush1.bf16.msra.mxu0 %v2886_v18  ;;  %v374_v18 = vunpack.c.l.bf16 %v2798_v55  ;;  %v393_v29 = vunpack.c.l.bf16 %v385_v26  ;;  %v2946_v55 = vld [vmem:[%s3477_s1] ss:$8 sps:$4 sm:$0xff]  }
  0x7d   :  { %1123 = vmatpush1.bf16.msra.mxu1 %v2892_v24  ;;  %1372 = vmatprep.subr.bf16.mxu0 %v2898_v62  ;;  %v408_v24 = vpack.c.bf16 %v400_v61, %v400_v61  ;;  %v2934_v62 = vld [vmem:[%s3477_s1 + $0x1f0] ss:$8 sps:$4 sm:$0xff]  }
  0x7e   :  { %1124 = vmatprep.subr.bf16.mxu1 %v2904_v47  ;;  %v2939_v47 = vld [vmem:[%s3477_s1 + $0x4] ss:$8 sps:$4 sm:$0xff]   ;;  %v2950_v61 = vsub.f32 %v2794_v8, %v374_v18  ;;  %v2979_v18 = vld [vmem:[%s3477_s1 + $0x10] ss:$8 sps:$4 sm:$0xff]  }
  0x7f   :  { %3683 = vst [vmem:[#allocation67_spill] sm:$0xff] %v2939_v47  ;;  %v2969_v8 = vld [vmem:[%s3477_s1 + $0x204] ss:$8 sps:$4 sm:$0xff]   ;;  %3684 = vst [vmem:[#allocation68_spill] sm:$0xff] %v2979_v18 }
  0x80   :  { %1373 = vmatpush1.bf16.msra.mxu0 %v2910_v1  ;;  %v373_v1 = vunpack.c.l.bf16 %v365_v63 }
  0x81   :  { %1125 = vmatpush1.bf16.msra.mxu1 %v2917_v50  ;;  %1383 = vmatprep.subr.bf16.mxu0 %v2939_v47  ;;  %v2958_v47 = vld [vmem:[%s3477_s1 + $0x14] ss:$8 sps:$4 sm:$0xff]  }
  0x82   :  { %1126 = vmatprep.subr.bf16.mxu1 %v2924_v10  ;;  %v2964_v10 = vsub.f32 %v377_v28, %v393_v29  ;;  %v2985_v28 = vld [vmem:[%s3477_s1 + $0x200] ss:$8 sps:$4 sm:$0xff]  }
  0x83   :  { %1375 = vmatmul.mubr.bf16.vlgmr.msra.gmra.mrb[0].mxu0 %v365_v63  ;;  %v2962_v63 = vsub.f32 %v2809_v53, %v373_v1  ;;  %v2991_v53 = vld [vmem:[%s3477_s1 + $0x24] ss:$8 sps:$4 sm:$0xff]   ;;  %v2997_v1 = vld [vmem:[%s3477_s1 + $0x214] ss:$8 sps:$4 sm:$0xff]   ;;  %v3004_v29 = vld [vmem:[%s3477_s1 + $0x20] ss:$8 sps:$4 sm:$0xff]  }
  0x84   :  { %1384 = vmatpush1.bf16.msra.mxu0 %v2946_v55  ;;  %1415 = vmatprep.mubr.bf16.mxu0 %v408_v24  ;;  %3685 = vst [vmem:[#allocation69_spill] sm:$0xff] %v2991_v53  ;;  %3686 = vst [vmem:[#allocation70_spill] sm:$0xff] %v3004_v29  ;;  %v3010_v24 = vld [vmem:[%s3477_s1 + $0x210] ss:$8 sps:$4 sm:$0xff]  }
  0x85   :  { %1127 = vmatpush1.bf16.msra.mxu1 %v2934_v62  ;;  %1385 = vmatprep.subr.bf16.mxu0 %v2958_v47 }
  0x86   :  { %1137 = vmatprep.subr.bf16.mxu1 %v2969_v8 }
  0x88   :  { %1129 = vmatmul.mubr.bf16.vlgmr.msra.gmra.mrb[0].mxu1 %v385_v26  ;;  %1386 = vmatpush1.bf16.msra.mxu0 %v2979_v18  ;;  %v3016_v26 = vld [vmem:[%s3477_s1 + $0x34] ss:$8 sps:$4 sm:$0xff]  }
  0x89   :  { %1138 = vmatpush1.bf16.msra.mxu1 %v2985_v28  ;;  %1387 = vmatprep.subr.bf16.mxu0 %v2991_v53  ;;  %3687 = vst [vmem:[#allocation71_spill] sm:$0xff] %v3016_v26  ;;  %v3034_v53 = vld [vmem:[%s3477_s1 + $0x220] ss:$8 sps:$4 sm:$0xff]   ;;  %v3046_v18 = vld [vmem:[%s3477_s1 + $0x234] ss:$8 sps:$4 sm:$0xff]  }
  0x8a   :  { %1139 = vmatprep.subr.bf16.mxu1 %v2997_v1  ;;  %1169 = vmatprep.mubr.bf16.mxu1 %v2974_v58  ;;  %3689 = vst [vmem:[#allocation73_spill] sm:$0xff] %v3034_v53  ;;  %3691 = vst [vmem:[#allocation75_spill] sm:$0xff] %v3046_v18 }
  0x8c   :  { %1388 = vmatpush1.bf16.msra.mxu0 %v3004_v29  ;;  %v3028_v29 = vld [vmem:[%s3477_s1 + $0x30] ss:$8 sps:$4 sm:$0xff]  }
  0x8d   :  { %1140 = vmatpush1.bf16.msra.mxu1 %v3010_v24  ;;  %1389 = vmatprep.subr.bf16.mxu0 %v3016_v26  ;;  %3688 = vst [vmem:[#allocation72_spill] sm:$0xff] %v3028_v29  ;;  %v3040_v26 = vld [vmem:[%s3477_s1 + $0x44] ss:$8 sps:$4 sm:$0xff]  }
  0x8e   :  { %1141 = vmatprep.subr.bf16.mxu1 %v3022_v13  ;;  %3690 = vst [vmem:[#allocation74_spill] sm:$0xff] %v3040_v26 }
  0x90   :  { %1390 = vmatpush1.bf16.msra.mxu0 %v3028_v29  ;;  %v3052_v29 = vld [vmem:[%s3477_s1 + $0x40] ss:$8 sps:$4 sm:$0xff]  }
  0x91   :  { %1142 = vmatpush1.bf16.msra.mxu1 %v3034_v53  ;;  %1391 = vmatprep.subr.bf16.mxu0 %v3040_v26  ;;  %3692 = vst [vmem:[#allocation76_spill] sm:$0xff] %v3052_v29  ;;  %v3058_v53 = vld [vmem:[%s3477_s1 + $0x230] ss:$8 sps:$4 sm:$0xff]   ;;  %v3064_v26 = vld [vmem:[%s3477_s1 + $0x54] ss:$8 sps:$4 sm:$0xff]  }
  0x92   :  { %1143 = vmatprep.subr.bf16.mxu1 %v3046_v18  ;;  %3693 = vst [vmem:[#allocation77_spill] sm:$0xff] %v3058_v53  ;;  %3694 = vst [vmem:[#allocation78_spill] sm:$0xff] %v3064_v26  ;;  %v3070_v18 = vld [vmem:[%s3477_s1 + $0x244] ss:$8 sps:$4 sm:$0xff]  }
  0x93   :  { %3695 = vst [vmem:[#allocation79_spill] sm:$0xff] %v3070_v18 }
  0x94   :  { %1392 = vmatpush1.bf16.msra.mxu0 %v3052_v29  ;;  %v3076_v29 = vld [vmem:[%s3477_s1 + $0x50] ss:$8 sps:$4 sm:$0xff]  }
  0x95   :  { %1144 = vmatpush1.bf16.msra.mxu1 %v3058_v53  ;;  %1393 = vmatprep.subr.bf16.mxu0 %v3064_v26  ;;  %3696 = vst [vmem:[#allocation80_spill] sm:$0xff] %v3076_v29  ;;  %v3082_v53 = vld [vmem:[%s3477_s1 + $0x240] ss:$8 sps:$4 sm:$0xff]   ;;  %v3088_v26 = vld [vmem:[%s3477_s1 + $0x64] ss:$8 sps:$4 sm:$0xff]  }
  0x96   :  { %1145 = vmatprep.subr.bf16.mxu1 %v3070_v18  ;;  %3697 = vst [vmem:[#allocation81_spill] sm:$0xff] %v3082_v53  ;;  %3698 = vst [vmem:[#allocation82_spill] sm:$0xff] %v3088_v26  ;;  %v3094_v18 = vld [vmem:[%s3477_s1 + $0x254] ss:$8 sps:$4 sm:$0xff]  }
  0x97   :  { %3699 = vst [vmem:[#allocation83_spill] sm:$0xff] %v3094_v18 }
  0x98   :  { %1394 = vmatpush1.bf16.msra.mxu0 %v3076_v29  ;;  %v3100_v29 = vld [vmem:[%s3477_s1 + $0x60] ss:$8 sps:$4 sm:$0xff]  }
  0x99   :  { %1146 = vmatpush1.bf16.msra.mxu1 %v3082_v53  ;;  %1395 = vmatprep.subr.bf16.mxu0 %v3088_v26  ;;  %3700 = vst [vmem:[#allocation84_spill] sm:$0xff] %v3100_v29  ;;  %v3106_v53 = vld [vmem:[%s3477_s1 + $0x250] ss:$8 sps:$4 sm:$0xff]   ;;  %v3112_v26 = vld [vmem:[%s3477_s1 + $0x74] ss:$8 sps:$4 sm:$0xff]  }
  0x9a   :  { %1147 = vmatprep.subr.bf16.mxu1 %v3094_v18  ;;  %3701 = vst [vmem:[#allocation85_spill] sm:$0xff] %v3112_v26  ;;  %v3118_v18 = vld [vmem:[%s3477_s1 + $0x264] ss:$8 sps:$4 sm:$0xff]  }
  0x9c   :  { %1396 = vmatpush1.bf16.msra.mxu0 %v3100_v29  ;;  %v3125_v29 = vld [vmem:[%s3477_s1 + $0x260] ss:$8 sps:$4 sm:$0xff]  }
  0x9d   :  { %1148 = vmatpush1.bf16.msra.mxu1 %v3106_v53  ;;  %1397 = vmatprep.subr.bf16.mxu0 %v3112_v26  ;;  %v3132_v26 = vld [vmem:[%s3477_s1 + $0x274] ss:$8 sps:$4 sm:$0xff]  }
  0x9e   :  { %1149 = vmatprep.subr.bf16.mxu1 %v3118_v18 }
  0xa0   :  { %1398 = vmatpush1.bf16.msra.mxu0 %v2171_v30  ;;  %v407_v30 = vpack.c.bf16 %v2578_v27, %v2578_v27  ;;  %v3732_v27 = vld [vmem:[#allocation33_spill] sm:$0xff] }
  0xa1   :  { %1150 = vmatpush1.bf16.msra.mxu1 %v3125_v29  ;;  %1399 = vmatprep.subr.bf16.mxu0 %v2181_v32  ;;  %v3702_v32 = vld [vmem:[#allocation12_spill] sm:$0xff] }
  0xa2   :  { %1151 = vmatprep.subr.bf16.mxu1 %v3132_v26 }
  0xa4   :  { %1400 = vmatpush1.bf16.msra.mxu0 %v2191_v35  ;;  %v3703_v35 = vld [vmem:[#allocation5_spill] sm:$0xff] }
  0xa5   :  { %1152 = vmatpush1.bf16.msra.mxu1 %v2176_v31  ;;  %1401 = vmatprep.subr.bf16.mxu0 %v2203_v37  ;;  %v410_v31 = vpack.c.bf16 %v2952_v34, %v2952_v34  ;;  %v3181_v37 = vpack.c.bf16 %v2950_v61, %v2950_v61  ;;  %v3733_v34 = vld [vmem:[#allocation35_spill] sm:$0xff] }
  0xa6   :  { %1153 = vmatprep.subr.bf16.mxu1 %v2186_v33  ;;  %v3173_v33 = vpack.c.bf16 %v3702_v32, %v3702_v32 }
  0xa8   :  { %1402 = vmatpush1.bf16.msra.mxu0 %v2217_v40  ;;  %v3706_v40 = vld [vmem:[#allocation10_spill] sm:$0xff] }
  0xa9   :  { %1154 = vmatpush1.bf16.msra.mxu1 %v2196_v36  ;;  %1403 = vmatprep.subr.bf16.mxu0 %v2229_v42  ;;  %v3704_v36 = vld [vmem:[#allocation6_spill] sm:$0xff] }
  0xaa   :  { %1155 = vmatprep.subr.bf16.mxu1 %v2210_v38  ;;  %v3705_v38 = vld [vmem:[#allocation8_spill] sm:$0xff]  ;;  %v3708_v42 = vld [vmem:[#allocation18_spill] sm:$0xff] }
  0xac   :  { %1404 = vmatpush1.bf16.msra.mxu0 %v2244_v45  ;;  %v3710_v45 = vld [vmem:[#allocation20_spill] sm:$0xff] }
  0xad   :  { %1156 = vmatpush1.bf16.msra.mxu1 %v2224_v41  ;;  %1405 = vmatprep.subr.bf16.mxu0 %v2262_v49  ;;  %v3707_v41 = vld [vmem:[#allocation11_spill] sm:$0xff]  ;;  %v3712_v49 = vld [vmem:[#allocation22_spill] sm:$0xff] }
  0xae   :  { %1157 = vmatprep.subr.bf16.mxu1 %v2236_v43  ;;  %v3709_v43 = vld [vmem:[#allocation13_spill] sm:$0xff] }
  0xb0   :  { %1406 = vmatpush1.bf16.msra.mxu0 %v2277_v52  ;;  %v3714_v52 = vld [vmem:[#allocation24_spill] sm:$0xff] }
  0xb1   :  { %1158 = vmatpush1.bf16.msra.mxu1 %v2249_v46  ;;  %1407 = vmatprep.subr.bf16.mxu0 %v2308_v60  ;;  %v3711_v46 = vld [vmem:[#allocation14_spill] sm:$0xff] }
  0xb2   :  { %1159 = vmatprep.subr.bf16.mxu1 %v2272_v51  ;;  %v3713_v51 = vld [vmem:[#allocation15_spill] sm:$0xff]  ;;  %v3716_v60 = vld [vmem:[#allocation26_spill] sm:$0xff] }
  0xb4   :  { %1408 = vmatpush1.bf16.msra.mxu0 %v2329_v3  ;;  %v3718_v3 = vld [vmem:[#allocation28_spill] sm:$0xff] }
  0xb5   :  { %1160 = vmatpush1.bf16.msra.mxu1 %v2287_v54  ;;  %1409 = vmatprep.subr.bf16.mxu0 %v2354_v12  ;;  %v3715_v54 = vld [vmem:[#allocation16_spill] sm:$0xff]  ;;  %v3720_v12 = vld [vmem:[#allocation30_spill] sm:$0xff] }
  0xb6   :  { %1161 = vmatprep.subr.bf16.mxu1 %v2321_v0  ;;  %v3717_v0 = vld [vmem:[#allocation17_spill] sm:$0xff] }
  0xb8   :  { %1410 = vmatpush1.bf16.msra.mxu0 %v2369_v19  ;;  %v3722_v19 = vld [vmem:[#allocation32_spill] sm:$0xff] }
  0xb9   :  { %1162 = vmatpush1.bf16.msra.mxu1 %v2349_v11  ;;  %1411 = vmatprep.subr.bf16.mxu0 %v2392_v56  ;;  %v3719_v11 = vld [vmem:[#allocation19_spill] sm:$0xff]  ;;  %v3724_v56 = vld [vmem:[#allocation34_spill] sm:$0xff] }
  0xba   :  { %1163 = vmatprep.subr.bf16.mxu1 %v2361_v16  ;;  %v3721_v16 = vld [vmem:[#allocation21_spill] sm:$0xff] }
  0xbc   :  { %1412 = vmatpush1.bf16.msra.mxu0 %v2412_v2  ;;  %v3726_v2 = vld [vmem:[#allocation36_spill] sm:$0xff] }
  0xbd   :  { %1164 = vmatpush1.bf16.msra.mxu1 %v2374_v23  ;;  %1413 = vmatprep.subr.bf16.mxu0 %v2424_v5  ;;  %v3723_v23 = vld [vmem:[#allocation23_spill] sm:$0xff]  ;;  %v3728_v5 = vld [vmem:[#allocation38_spill] sm:$0xff] }
  0xbe   :  { %1165 = vmatprep.subr.bf16.mxu1 %v2397_v57  ;;  %v3725_v57 = vld [vmem:[#allocation25_spill] sm:$0xff] }
  0xc0   :  { %1414 = vmatpush1.bf16.msra.mxu0 %v2436_v7  ;;  %v3730_v7 = vld [vmem:[#allocation40_spill] sm:$0xff] }
  0xc1   :  { %1166 = vmatpush1.bf16.msra.mxu1 %v2417_v4  ;;  %1424 = vmatprep.subr.bf16.mxu0 %v2448_v9  ;;  %v3727_v4 = vld [vmem:[#allocation27_spill] sm:$0xff] }
  0xc2   :  { %1167 = vmatprep.subr.bf16.mxu1 %v2429_v6  ;;  %v3729_v6 = vld [vmem:[#allocation29_spill] sm:$0xff]  ;;  %v3731_v9 = vld [vmem:[#allocation31_spill] sm:$0xff] }
  0xc3   :  { %1416 = vmatmul.mubr.bf16.vlgmr.msra.gmra.mrb[0].mxu0 %v407_v30  ;;  %v3734_v30 = vld [vmem:[#allocation37_spill] sm:$0xff] }
  0xc4   :  { %1425 = vmatpush1.bf16.msra.mxu0 %v2504_v25  ;;  %1456 = vmatprep.mubr.bf16.mxu0 %v410_v31  ;;  %v3735_v31 = vld [vmem:[#allocation39_spill] sm:$0xff] }
  0xc5   :  { %1168 = vmatpush1.bf16.msra.mxu1 %v3703_v35  ;;  %1426 = vmatprep.subr.bf16.mxu0 %v2518_v48  ;;  %v3736_v35 = vld [vmem:[#allocation41_spill] sm:$0xff] }
  0xc6   :  { %1178 = vmatprep.subr.bf16.mxu1 %v3704_v36  ;;  %v3737_v36 = vld [vmem:[#allocation53_spill] sm:$0xff] }
  0xc8   :  { %1170 = vmatmul.mubr.bf16.vlgmr.msra.gmra.mrb[0].mxu1 %v3173_v33  ;;  %1427 = vmatpush1.bf16.msra.mxu0 %v2558_v21 }
  0xc9   :  { %1179 = vmatpush1.bf16.msra.mxu1 %v3705_v38  ;;  %1428 = vmatprep.subr.bf16.mxu0 %v2573_v17 }
  0xca   :  { %1180 = vmatprep.subr.bf16.mxu1 %v3706_v40  ;;  %1210 = vmatprep.mubr.bf16.mxu1 %v3181_v37 }
  0xcc   :  { %1429 = vmatpush1.bf16.msra.mxu0 %v2583_v44 }
  0xcd   :  { %1181 = vmatpush1.bf16.msra.mxu1 %v3707_v41  ;;  %1430 = vmatprep.subr.bf16.mxu0 %v3708_v42 }
  0xce   :  { %1182 = vmatprep.subr.bf16.mxu1 %v3709_v43 }
  0xd0   :  { %1431 = vmatpush1.bf16.msra.mxu0 %v3710_v45 }
  0xd1   :  { %1183 = vmatpush1.bf16.msra.mxu1 %v3711_v46  ;;  %1432 = vmatprep.subr.bf16.mxu0 %v3712_v49 }
  0xd2   :  { %1184 = vmatprep.subr.bf16.mxu1 %v3713_v51 }
  0xd4   :  { %1433 = vmatpush1.bf16.msra.mxu0 %v3714_v52 }
  0xd5   :  { %1185 = vmatpush1.bf16.msra.mxu1 %v3715_v54  ;;  %1434 = vmatprep.subr.bf16.mxu0 %v3716_v60 }
  0xd6   :  { %1186 = vmatprep.subr.bf16.mxu1 %v3717_v0 }
  0xd8   :  { %1435 = vmatpush1.bf16.msra.mxu0 %v3718_v3 }
  0xd9   :  { %1187 = vmatpush1.bf16.msra.mxu1 %v3719_v11  ;;  %1436 = vmatprep.subr.bf16.mxu0 %v3720_v12 }
  0xda   :  { %1188 = vmatprep.subr.bf16.mxu1 %v3721_v16 }
  0xdc   :  { %1437 = vmatpush1.bf16.msra.mxu0 %v3722_v19 }
  0xdd   :  { %1189 = vmatpush1.bf16.msra.mxu1 %v3723_v23  ;;  %1438 = vmatprep.subr.bf16.mxu0 %v3724_v56 }
  0xde   :  { %1190 = vmatprep.subr.bf16.mxu1 %v3725_v57 }
  0xe0   :  { %1439 = vmatpush1.bf16.msra.mxu0 %v3726_v2 }
  0xe1   :  { %1191 = vmatpush1.bf16.msra.mxu1 %v3727_v4  ;;  %1440 = vmatprep.subr.bf16.mxu0 %v3728_v5  ;;  %v3741_v5 = vld [vmem:[#allocation58_spill] sm:$0xff] }
  0xe2   :  { %1192 = vmatprep.subr.bf16.mxu1 %v3729_v6 }
  0xe4   :  { %1441 = vmatpush1.bf16.msra.mxu0 %v3730_v7  ;;  %v3739_v7 = vld [vmem:[#allocation55_spill] sm:$0xff] }
  0xe5   :  { %1193 = vmatpush1.bf16.msra.mxu1 %v3731_v9  ;;  %1442 = vmatprep.subr.bf16.mxu0 %v2750_v22  ;;  %v3738_v22 = vld [vmem:[#allocation43_spill] sm:$0xff] }
  0xe6   :  { %1194 = vmatprep.subr.bf16.mxu1 %v3732_v27 }
  0xe8   :  { %1443 = vmatpush1.bf16.msra.mxu0 %v2776_v20  ;;  %v3740_v20 = vld [vmem:[#allocation45_spill] sm:$0xff] }
  0xe9   :  { %1195 = vmatpush1.bf16.msra.mxu1 %v3733_v34  ;;  %1444 = vmatprep.subr.bf16.mxu0 %v2788_v59  ;;  %v3742_v59 = vld [vmem:[#allocation48_spill] sm:$0xff] }
  0xea   :  { %1196 = vmatprep.subr.bf16.mxu1 %v3734_v30  ;;  %v3743_v30 = vld [vmem:[#allocation60_spill] sm:$0xff] }
  0xec   :  { %1445 = vmatpush1.bf16.msra.mxu0 %v2815_v14  ;;  %v3744_v14 = vld [vmem:[#allocation50_spill] sm:$0xff] }
  0xed   :  { %1197 = vmatpush1.bf16.msra.mxu1 %v3735_v31  ;;  %1446 = vmatprep.subr.bf16.mxu0 %v2827_v15  ;;  %v396_v15 = vunpack.c.l.bf16 %v2974_v58  ;;  %v3745_v31 = vld [vmem:[#allocation62_spill] sm:$0xff]  ;;  %v409_v58 = vpack.c.bf16 %v2964_v10, %v2964_v10  ;;  %v3755_v10 = vld [vmem:[#allocation67_spill] sm:$0xff] }
  0xee   :  { %1198 = vmatprep.subr.bf16.mxu1 %v3736_v35  ;;  %v3746_v35 = vld [vmem:[#allocation52_spill] sm:$0xff] }
  0xf0   :  { %1447 = vmatpush1.bf16.msra.mxu0 %v3737_v36  ;;  %v3747_v36 = vld [vmem:[#allocation64_spill] sm:$0xff] }
  0xf1   :  { %1199 = vmatpush1.bf16.msra.mxu1 %v3738_v22  ;;  %1448 = vmatprep.subr.bf16.mxu0 %v3739_v7  ;;  %v3748_v22 = vld [vmem:[#allocation54_spill] sm:$0xff]  ;;  %v3749_v7 = vld [vmem:[#allocation57_spill] sm:$0xff] }
  0xf2   :  { %1200 = vmatprep.subr.bf16.mxu1 %v3740_v20 }
  0xf4   :  { %1449 = vmatpush1.bf16.msra.mxu0 %v3741_v5  ;;  %v404_v5 = vsub.f32 %v2490_v39, %v396_v15  ;;  %v3251_v39 = vpack.c.bf16 %v2962_v63, %v2962_v63  ;;  %v3754_v15 = vld [vmem:[#allocation65_spill] sm:$0xff] }
  0xf5   :  { %1201 = vmatpush1.bf16.msra.mxu1 %v3742_v59  ;;  %1450 = vmatprep.subr.bf16.mxu0 %v3743_v30  ;;  %v3750_v59 = vld [vmem:[#allocation66_spill] sm:$0xff]  ;;  %v3751_v30 = vld [vmem:[#allocation59_spill] sm:$0xff] }
  0xf6   :  { %1202 = vmatprep.subr.bf16.mxu1 %v3744_v14 }
  0xf8   :  { %1451 = vmatpush1.bf16.msra.mxu0 %v3745_v31  ;;  %v412_v31 = vpack.c.bf16 %v404_v5, %v404_v5  ;;  %v3758_v5 = vld [vmem:[#allocation68_spill] sm:$0xff] }
  0xf9   :  { %1203 = vmatpush1.bf16.msra.mxu1 %v3746_v35  ;;  %1452 = vmatprep.subr.bf16.mxu0 %v3747_v36  ;;  %v3752_v35 = vld [vmem:[#allocation61_spill] sm:$0xff]  ;;  %v3753_v36 = vld [vmem:[#allocation63_spill] sm:$0xff] }
  0xfa   :  { %1204 = vmatprep.subr.bf16.mxu1 %v3748_v22 }
  0xfc   :  { %1453 = vmatpush1.bf16.msra.mxu0 %v2917_v50 }
  0xfd   :  { %1205 = vmatpush1.bf16.msra.mxu1 %v3749_v7  ;;  %1454 = vmatprep.subr.bf16.mxu0 %v3750_v59 }
  0xfe   :  { %1206 = vmatprep.subr.bf16.mxu1 %v3751_v30 }
 0x100   :  { %1455 = vmatpush1.bf16.msra.mxu0 %v2934_v62 }
 0x101   :  { %1207 = vmatpush1.bf16.msra.mxu1 %v3752_v35  ;;  %1465 = vmatprep.subr.bf16.mxu0 %v2969_v8  ;;  %v3756_v8 = vld [vmem:[#allocation7_spill] sm:$0xff] }
 0x102   :  { %1208 = vmatprep.subr.bf16.mxu1 %v3753_v36 }
 0x103   :  { %1457 = vmatmul.mubr.bf16.vlgmr.msra.gmra.mrb[0].mxu0 %v409_v58  ;;  %v3761_v58 = vld [vmem:[#allocation77_spill] sm:$0xff] }
 0x104   :  { %1466 = vmatpush1.bf16.msra.mxu0 %v2985_v28  ;;  %1497 = vmatprep.mubr.bf16.mxu0 %v412_v31  ;;  %v3757_v28 = vld [vmem:[#allocation73_spill] sm:$0xff]  ;;  %v3759_v31 = vld [vmem:[#allocation75_spill] sm:$0xff] }
 0x105   :  { %1209 = vmatpush1.bf16.msra.mxu1 %v3754_v15  ;;  %1467 = vmatprep.subr.bf16.mxu0 %v2997_v1  ;;  %v3760_v1 = vld [vmem:[#allocation69_spill] sm:$0xff] }
 0x106   :  { %1219 = vmatprep.subr.bf16.mxu1 %v3755_v10  ;;  %v3762_v10 = vld [vmem:[#allocation70_spill] sm:$0xff] }
 0x108   :  { %1211 = vmatmul.mubr.bf16.vlgmr.msra.gmra.mrb[0].mxu1 %v3251_v39  ;;  %1468 = vmatpush1.bf16.msra.mxu0 %v3010_v24  ;;  %v3763_v24 = vld [vmem:[#allocation79_spill] sm:$0xff] }
 0x109   :  { %1220 = vmatpush1.bf16.msra.mxu1 %v2946_v55  ;;  %1469 = vmatprep.subr.bf16.mxu0 %v3022_v13  ;;  %v3764_v55 = vld [vmem:[#allocation71_spill] sm:$0xff]  ;;  %v3765_v13 = vld [vmem:[#allocation81_spill] sm:$0xff] }
 0x10a   :  { %1221 = vmatprep.subr.bf16.mxu1 %v2958_v47  ;;  %1251 = vmatprep.mubr.bf16.mxu1 %v3756_v8  ;;  %v3766_v47 = vld [vmem:[#allocation72_spill] sm:$0xff]  ;;  %v3767_v8 = vld [vmem:[#allocation83_spill] sm:$0xff] }
 0x10c   :  { %1470 = vmatpush1.bf16.msra.mxu0 %v3757_v28  ;;  %v3768_v28 = vld [vmem:[#allocation74_spill] sm:$0xff] }
 0x10d   :  { %1222 = vmatpush1.bf16.msra.mxu1 %v3758_v5  ;;  %1471 = vmatprep.subr.bf16.mxu0 %v3759_v31  ;;  %v3769_v5 = vld [vmem:[#allocation76_spill] sm:$0xff]  ;;  %v3770_v31 = vld [vmem:[#allocation78_spill] sm:$0xff] }
 0x10e   :  { %1223 = vmatprep.subr.bf16.mxu1 %v3760_v1  ;;  %v3771_v1 = vld [vmem:[#allocation80_spill] sm:$0xff] }
 0x110   :  { %1472 = vmatpush1.bf16.msra.mxu0 %v3761_v58  ;;  %v3772_v58 = vld [vmem:[#allocation82_spill] sm:$0xff] }
 0x111   :  { %1224 = vmatpush1.bf16.msra.mxu1 %v3762_v10  ;;  %1473 = vmatprep.subr.bf16.mxu0 %v3763_v24  ;;  %v1997_v10 = vld [vmem:[%s3477_s1 + $0x270] ss:$8 sps:$4 sm:$0xff]   ;;  %v3774_v24 = vld [vmem:[#allocation85_spill] sm:$0xff] }
 0x112   :  { %1225 = vmatprep.subr.bf16.mxu1 %v3764_v55  ;;  %v2001_v55 = vld [vmem:[%s3477_s1 + $0x294] ss:$8 sps:$4 sm:$0xff]  }
 0x114   :  { %1474 = vmatpush1.bf16.msra.mxu0 %v3765_v13  ;;  %v2002_v13 = vld [vmem:[%s3477_s1 + $0x84] ss:$8 sps:$4 sm:$0xff]  }
 0x115   :  { %1226 = vmatpush1.bf16.msra.mxu1 %v3766_v47  ;;  %1475 = vmatprep.subr.bf16.mxu0 %v3767_v8  ;;  %v2003_v47 = vld [vmem:[%s3477_s1 + $0x290] ss:$8 sps:$4 sm:$0xff]   ;;  %v2004_v8 = vld [vmem:[%s3477_s1 + $0x80] ss:$8 sps:$4 sm:$0xff]  }
 0x116   :  { %1227 = vmatprep.subr.bf16.mxu1 %v3768_v28  ;;  %v2005_v28 = vld [vmem:[%s3477_s1 + $0x2a4] ss:$8 sps:$4 sm:$0xff]  }
 0x118   :  { %1476 = vmatpush1.bf16.msra.mxu0 %v3106_v53  ;;  %v3773_v53 = vld [vmem:[#allocation84_spill] sm:$0xff] }
 0x119   :  { %1228 = vmatpush1.bf16.msra.mxu1 %v3769_v5  ;;  %1477 = vmatprep.subr.bf16.mxu0 %v3118_v18  ;;  %v1998_v18 = vld [vmem:[%s3477_s1 + $0x284] ss:$8 sps:$4 sm:$0xff]   ;;  %v2006_v5 = vld [vmem:[%s3477_s1 + $0x94] ss:$8 sps:$4 sm:$0xff]  }
 0x11a   :  { %1229 = vmatprep.subr.bf16.mxu1 %v3770_v31  ;;  %v2007_v31 = vld [vmem:[%s3477_s1 + $0x2a0] ss:$8 sps:$4 sm:$0xff]  }
 0x11c   :  { %1478 = vmatpush1.bf16.msra.mxu0 %v3125_v29  ;;  %v1999_v29 = vld [vmem:[%s3477_s1 + $0x280] ss:$8 sps:$4 sm:$0xff]  }
 0x11d   :  { %1230 = vmatpush1.bf16.msra.mxu1 %v3771_v1  ;;  %1479 = vmatprep.subr.bf16.mxu0 %v3132_v26  ;;  %v2000_v26 = vld [vmem:[%s3477_s1 + $0x70] ss:$8 sps:$4 sm:$0xff]  }
 0x11e   :  { %1231 = vmatprep.subr.bf16.mxu1 %v3772_v58  ;;  %v2008_v1 = vld [vmem:[%s3477_s1 + $0x90] ss:$8 sps:$4 sm:$0xff]   ;;  %v2009_v58 = vld [vmem:[%s3477_s1 + $0x2b4] ss:$8 sps:$4 sm:$0xff]  }
 0x120   :  { %1480 = vmatpush1.bf16.msra.mxu0 %v1997_v10  ;;  %v2010_v10 = vld [vmem:[%s3477_s1 + $0xa4] ss:$8 sps:$4 sm:$0xff]  }
 0x121   :  { %1232 = vmatpush1.bf16.msra.mxu1 %v3773_v53  ;;  %1481 = vmatprep.subr.bf16.mxu0 %v1998_v18  ;;  %v2011_v53 = vld [vmem:[%s3477_s1 + $0x2b0] ss:$8 sps:$4 sm:$0xff]   ;;  %v2012_v18 = vld [vmem:[%s3477_s1 + $0xa0] ss:$8 sps:$4 sm:$0xff]  }
 0x122   :  { %1233 = vmatprep.subr.bf16.mxu1 %v3774_v24  ;;  %v2013_v24 = vld [vmem:[%s3477_s1 + $0x2c4] ss:$8 sps:$4 sm:$0xff]  }
 0x124   :  { %1482 = vmatpush1.bf16.msra.mxu0 %v1999_v29  ;;  %v2014_v29 = vld [vmem:[%s3477_s1 + $0xb4] ss:$8 sps:$4 sm:$0xff]  }
 0x125   :  { %1234 = vmatpush1.bf16.msra.mxu1 %v2000_v26  ;;  %1483 = vmatprep.subr.bf16.mxu0 %v2001_v55  ;;  %v2015_v26 = vld [vmem:[%s3477_s1 + $0x2c0] ss:$8 sps:$4 sm:$0xff]   ;;  %v2016_v55 = vld [vmem:[%s3477_s1 + $0xb0] ss:$8 sps:$4 sm:$0xff]  }
 0x126   :  { %1235 = vmatprep.subr.bf16.mxu1 %v2002_v13  ;;  %v2017_v13 = vld [vmem:[%s3477_s1 + $0x2d4] ss:$8 sps:$4 sm:$0xff]  }
 0x128   :  { %1484 = vmatpush1.bf16.msra.mxu0 %v2003_v47  ;;  %v2018_v47 = vld [vmem:[%s3477_s1 + $0xc4] ss:$8 sps:$4 sm:$0xff]  }
 0x129   :  { %1236 = vmatpush1.bf16.msra.mxu1 %v2004_v8  ;;  %1485 = vmatprep.subr.bf16.mxu0 %v2005_v28  ;;  %v395_v8 = vunpack.c.l.bf16 %v3173_v33  ;;  %v398_v28 = vunpack.c.l.bf16 %v3181_v37  ;;  %v2022_v33 = vld [vmem:[%s3477_s1 + $0xd4] ss:$8 sps:$4 sm:$0xff]  }
 0x12a   :  { %1237 = vmatprep.subr.bf16.mxu1 %v2006_v5  ;;  %v2019_v5 = vld [vmem:[%s3477_s1 + $0x2d0] ss:$8 sps:$4 sm:$0xff]  }
 0x12b   :  { %v403_v37 = vsub.f32 %v3702_v32, %v395_v8  ;;  %v2026_v32 = vld [vmem:[%s3477_s1 + $0xe4] ss:$8 sps:$4 sm:$0xff]  }
 0x12c   :  { %1486 = vmatpush1.bf16.msra.mxu0 %v2007_v31  ;;  %v2020_v31 = vld [vmem:[%s3477_s1 + $0xc0] ss:$8 sps:$4 sm:$0xff]   ;;  %v2032_v8 = vld [vmem:[%s3477_s1 + $0x104] ss:$8 sps:$4 sm:$0xff]  }
 0x12d   :  { %1238 = vmatpush1.bf16.msra.mxu1 %v2008_v1  ;;  %1487 = vmatprep.subr.bf16.mxu0 %v2009_v58  ;;  %v2021_v1 = vld [vmem:[%s3477_s1 + $0x2e4] ss:$8 sps:$4 sm:$0xff]   ;;  %v2023_v58 = vld [vmem:[%s3477_s1 + $0x2e0] ss:$8 sps:$4 sm:$0xff]  }
 0x12e   :  { %1239 = vmatprep.subr.bf16.mxu1 %v2010_v10  ;;  %v406_v10 = vsub.f32 %v2950_v61, %v398_v28  ;;  %v2027_v61 = vld [vmem:[%s3477_s1 + $0x2f0] ss:$8 sps:$4 sm:$0xff]   ;;  %v3775_v28 = vld [vmem:[#allocation9_spill] sm:$0xff] }
 0x130   :  { %1488 = vmatpush1.bf16.msra.mxu0 %v2011_v53  ;;  %v2024_v53 = vld [vmem:[%s3477_s1 + $0xd0] ss:$8 sps:$4 sm:$0xff]  }
 0x131   :  { %1240 = vmatpush1.bf16.msra.mxu1 %v2012_v18  ;;  %1489 = vmatprep.subr.bf16.mxu0 %v2013_v24  ;;  %v2025_v18 = vld [vmem:[%s3477_s1 + $0x2f4] ss:$8 sps:$4 sm:$0xff]   ;;  %v411_v24 = vpack.c.bf16 %v403_v37, %v403_v37 }
 0x132   :  { %1241 = vmatprep.subr.bf16.mxu1 %v2014_v29  ;;  %v414_v29 = vpack.c.bf16 %v406_v10, %v406_v10 }
 0x134   :  { %1490 = vmatpush1.bf16.msra.mxu0 %v2015_v26  ;;  %v2028_v26 = vld [vmem:[%s3477_s1 + $0xe0] ss:$8 sps:$4 sm:$0xff]  }
 0x135   :  { %1242 = vmatpush1.bf16.msra.mxu1 %v2016_v55  ;;  %1491 = vmatprep.subr.bf16.mxu0 %v2017_v13  ;;  %v2029_v55 = vld [vmem:[%s3477_s1 + $0x304] ss:$8 sps:$4 sm:$0xff]   ;;  %v2030_v13 = vld [vmem:[%s3477_s1 + $0xf4] ss:$8 sps:$4 sm:$0xff]  }
 0x136   :  { %1243 = vmatprep.subr.bf16.mxu1 %v2018_v47  ;;  %v2031_v47 = vld [vmem:[%s3477_s1 + $0xf0] ss:$8 sps:$4 sm:$0xff]   ;;  %s2057_s1 = smov [#allocation2]  }
 0x137   :  { %s1560_s25 = sshll.u32 %s2057_s1, 4  ;;  %s1561_s25 = int_to_ptr.vmem [resolvable:$true] %s1560_s25 }
 0x138   :  { %1492 = vmatpush1.bf16.msra.mxu0 %v2019_v5  ;;  %s2033_s26 = scalar_lea.vmem %s1561_s25, 128  ;;  %p2038_p1 = scmp.lt.s32.totalorder %s1561_s25, %s1561_s25 }
 0x139   :  { %1244 = vmatpush1.bf16.msra.mxu1 %v2020_v31  ;;  %1493 = vmatprep.subr.bf16.mxu0 %v2021_v1  ;;  %p2034_p0 = scmp.ne.s32.totalorder %s1561_s25, %s2033_s26  ;;  %p2039_p2 = scmp.lt.s32.totalorder %s2033_s26, %s2033_s26 }
 0x13a   :  { %1245 = vmatprep.subr.bf16.mxu1 %v2022_v33 }
 0x13b   :  { %p2040_p3 = por %p2039_p2, %p2038_p1 }
 0x13c   :  { %1494 = vmatpush1.bf16.msra.mxu0 %v2023_v58 }
 0x13d   :  { %1246 = vmatpush1.bf16.msra.mxu1 %v2024_v53  ;;  %1495 = vmatprep.subr.bf16.mxu0 %v2025_v18  ;;  %p2041_p4 = pnand %p2040_p3, %p2034_p0 }
 0x13e   :  { %1247 = vmatprep.subr.bf16.mxu1 %v2026_v32 }
 0x140   :  { %1496 = vmatpush1.bf16.msra.mxu0 %v2027_v61 }
 0x141   :  { %1248 = vmatpush1.bf16.msra.mxu1 %v2028_v26  ;;  %1506 = vmatprep.subr.bf16.mxu0 %v2029_v55 }
 0x142   :  { %1249 = vmatprep.subr.bf16.mxu1 %v2030_v13 }
 0x143   :  { %1498 = vmatmul.mubr.bf16.vlgmr.msra.gmra.mrb[0].mxu0 %v411_v24 }
 0x144   :  { %1507 = vmatpush1.bf16.msra.mxu0 %v3705_v38  ;;  %1538 = vmatprep.mubr.bf16.mxu0 %v414_v29  ;;  %v3776_v38 = vld [vmem:[#allocation47_spill] sm:$0xff] }
 0x145   :  { %1250 = vmatpush1.bf16.msra.mxu1 %v2031_v47  ;;  %1508 = vmatprep.subr.bf16.mxu0 %v3706_v40  ;;  %v3782_v40 = vld [vmem:[#allocation42_spill] sm:$0xff] }
 0x146   :  { %1260 = vmatprep.subr.bf16.mxu1 %v2032_v8 }
 0x148   :  { %1252 = vmatmul.mubr.bf16.vlgmr.msra.gmra.mrb[0].mxu1 %v3775_v28  ;;  %1509 = vmatpush1.bf16.msra.mxu0 %v3707_v41  ;;  %v3783_v41 = vld [vmem:[#allocation43_spill] sm:$0xff] }
 0x149   :  { %1261 = vmatpush1.bf16.msra.mxu1 %v2504_v25  ;;  %1510 = vmatprep.subr.bf16.mxu0 %v3709_v43  ;;  %v3777_v25 = vld [vmem:[#allocation37_spill] sm:$0xff]  ;;  %v3785_v43 = vld [vmem:[#allocation46_spill] sm:$0xff] }
 0x14a   :  { %1262 = vmatprep.subr.bf16.mxu1 %v2518_v48  ;;  %1292 = vmatprep.mubr.bf16.mxu1 %v3776_v38  ;;  %v3778_v48 = vld [vmem:[#allocation38_spill] sm:$0xff] }
 0x14c   :  { %1511 = vmatpush1.bf16.msra.mxu0 %v3711_v46  ;;  %v3787_v46 = vld [vmem:[#allocation49_spill] sm:$0xff] }
 0x14d   :  { %1263 = vmatpush1.bf16.msra.mxu1 %v2558_v21  ;;  %1512 = vmatprep.subr.bf16.mxu0 %v3713_v51  ;;  %v3779_v21 = vld [vmem:[#allocation39_spill] sm:$0xff]  ;;  %v3789_v51 = vld [vmem:[#allocation52_spill] sm:$0xff] }
 0x14e   :  { %1264 = vmatprep.subr.bf16.mxu1 %v2573_v17  ;;  %v3780_v17 = vld [vmem:[#allocation40_spill] sm:$0xff] }
 0x150   :  { %1513 = vmatpush1.bf16.msra.mxu0 %v3715_v54  ;;  %v3791_v54 = vld [vmem:[#allocation55_spill] sm:$0xff] }
 0x151   :  { %1265 = vmatpush1.bf16.msra.mxu1 %v2583_v44  ;;  %1514 = vmatprep.subr.bf16.mxu0 %v3717_v0  ;;  %v3781_v44 = vld [vmem:[#allocation41_spill] sm:$0xff]  ;;  %v3793_v0 = vld [vmem:[#allocation60_spill] sm:$0xff] }
 0x152   :  { %1266 = vmatprep.subr.bf16.mxu1 %v3708_v42  ;;  %v3784_v42 = vld [vmem:[#allocation44_spill] sm:$0xff] }
 0x154   :  { %1515 = vmatpush1.bf16.msra.mxu0 %v3719_v11 }
 0x155   :  { %1267 = vmatpush1.bf16.msra.mxu1 %v3710_v45  ;;  %1516 = vmatprep.subr.bf16.mxu0 %v3721_v16  ;;  %v3786_v45 = vld [vmem:[#allocation48_spill] sm:$0xff] }
 0x156   :  { %1268 = vmatprep.subr.bf16.mxu1 %v3712_v49  ;;  %v3788_v49 = vld [vmem:[#allocation51_spill] sm:$0xff] }
 0x158   :  { %1517 = vmatpush1.bf16.msra.mxu0 %v3723_v23 }
 0x159   :  { %1269 = vmatpush1.bf16.msra.mxu1 %v3714_v52  ;;  %1518 = vmatprep.subr.bf16.mxu0 %v3725_v57  ;;  %v3790_v52 = vld [vmem:[#allocation53_spill] sm:$0xff] }
 0x15a   :  { %1270 = vmatprep.subr.bf16.mxu1 %v3716_v60  ;;  %v3792_v60 = vld [vmem:[#allocation58_spill] sm:$0xff] }
 0x15c   :  { %1519 = vmatpush1.bf16.msra.mxu0 %v3727_v4 }
 0x15d   :  { %1271 = vmatpush1.bf16.msra.mxu1 %v3718_v3  ;;  %1520 = vmatprep.subr.bf16.mxu0 %v3729_v6  ;;  %v3794_v3 = vld [vmem:[#allocation62_spill] sm:$0xff] }
 0x15e   :  { %1272 = vmatprep.subr.bf16.mxu1 %v3720_v12  ;;  %v3796_v12 = vld [vmem:[#allocation56_spill] sm:$0xff] }
 0x160   :  { %1521 = vmatpush1.bf16.msra.mxu0 %v3731_v9 }
 0x161   :  { %1273 = vmatpush1.bf16.msra.mxu1 %v3722_v19  ;;  %1522 = vmatprep.subr.bf16.mxu0 %v3732_v27 }
 0x162   :  { %1274 = vmatprep.subr.bf16.mxu1 %v3724_v56 }
 0x164   :  { %1523 = vmatpush1.bf16.msra.mxu0 %v3733_v34 }
 0x165   :  { %1275 = vmatpush1.bf16.msra.mxu1 %v3726_v2  ;;  %1524 = vmatprep.subr.bf16.mxu0 %v3777_v25 }
 0x166   :  { %1276 = vmatprep.subr.bf16.mxu1 %v3778_v48 }
 0x168   :  { %1525 = vmatpush1.bf16.msra.mxu0 %v3779_v21 }
 0x169   :  { %1277 = vmatpush1.bf16.msra.mxu1 %v3780_v17  ;;  %1526 = vmatprep.subr.bf16.mxu0 %v3781_v44 }
 0x16a   :  { %1278 = vmatprep.subr.bf16.mxu1 %v3782_v40 }
 0x16c   :  { %1527 = vmatpush1.bf16.msra.mxu0 %v3783_v41 }
 0x16d   :  { %1279 = vmatpush1.bf16.msra.mxu1 %v3784_v42  ;;  %1528 = vmatprep.subr.bf16.mxu0 %v3740_v20  ;;  %v397_v20 = vunpack.c.l.bf16 %v3251_v39 }
 0x16e   :  { %1280 = vmatprep.subr.bf16.mxu1 %v3785_v43 }
 0x170   :  { %1529 = vmatpush1.bf16.msra.mxu0 %v3786_v45 }
 0x171   :  { %1281 = vmatpush1.bf16.msra.mxu1 %v3787_v46  ;;  %1530 = vmatprep.subr.bf16.mxu0 %v3744_v14  ;;  %v405_v14 = vsub.f32 %v2962_v63, %v397_v20 }
 0x172   :  { %1282 = vmatprep.subr.bf16.mxu1 %v3788_v49 }
 0x173   :  { %v413_v11 = vpack.c.bf16 %v405_v14, %v405_v14 }
 0x174   :  { %1531 = vmatpush1.bf16.msra.mxu0 %v3789_v51 }
 0x175   :  { %1283 = vmatpush1.bf16.msra.mxu1 %v3790_v52  ;;  %1532 = vmatprep.subr.bf16.mxu0 %v3748_v22  ;;  %v3795_v22 = vld [vmem:[#allocation64_spill] sm:$0xff] }
 0x176   :  { %1284 = vmatprep.subr.bf16.mxu1 %v3791_v54 }
 0x178   :  { %1533 = vmatpush1.bf16.msra.mxu0 %v3749_v7 }
 0x179   :  { %1285 = vmatpush1.bf16.msra.mxu1 %v3792_v60  ;;  %1534 = vmatprep.subr.bf16.mxu0 %v3751_v30 }
 0x17a   :  { %1286 = vmatprep.subr.bf16.mxu1 %v3793_v0 }
 0x17c   :  { %1535 = vmatpush1.bf16.msra.mxu0 %v3752_v35 }
 0x17d   :  { %1287 = vmatpush1.bf16.msra.mxu1 %v3794_v3  ;;  %1536 = vmatprep.subr.bf16.mxu0 %v3753_v36 }
 0x17e   :  { %1288 = vmatprep.subr.bf16.mxu1 %v3795_v22 }
 0x180   :  { %1537 = vmatpush1.bf16.msra.mxu0 %v3754_v15 }
 0x181   :  { %1289 = vmatpush1.bf16.msra.mxu1 %v2917_v50 }
 0x182   :  { %1290 = vmatprep.subr.bf16.mxu1 %v3750_v59 }
 0x183   :  { %1539 = vmatmul.mubr.bf16.vlgmr.msra.gmra.mrb[0].mxu0 %v413_v11 }
 0x185   :  { %1291 = vmatpush1.bf16.msra.mxu1 %v2934_v62 }
 0x188   :  { %1293 = vmatmul.mubr.bf16.vlgmr.msra.gmra.mrb[0].mxu1 %v3796_v12 }
 0x256   :  { %v1540_v63 = vpop.f32.mrb[0].mxu0 }
 0x257   :  { %v1542_v16 = vpop.f32.mrb[1].mxu0 }
 0x258   :  { %v1544_v19 = vpop.f32.mrb[2].mxu0 }
 0x259   :  { %v1545_v23 = vpop.f32.mrb[3].mxu0 }
 0x25b   :  { %v1294_v56 = vpop.f32.mrb[0].mxu1 }
 0x25c   :  { %v1698_v57 = vadd.f32 %v1540_v63, %v1294_v56  ;;  %v1296_v2 = vpop.f32.mrb[1].mxu1 }
 0x25d   :  { %v1699_v4 = vadd.f32 %v1542_v16, %v1296_v2  ;;  %v1298_v6 = vpop.f32.mrb[2].mxu1 }
 0x25e   :  { %v1299_v7 = vpop.f32.mrb[3].mxu1 }
 0x25f   :  { %v1549_v9 = vsub.f32 0.0, %v1699_v4 }
 0x261   :  { %v1550_v27 = vmul.f32 1.442695, %v1549_v9 }
 0x263   :  { %1965 = vpow2.f32 %v1550_v27 }
 0x26d   :  { %v1966_v59 = vpop.eup %1965 }
 0x26e   :  { %v1552_v50 = vmul.f32 %v1966_v59, %v1698_v57 }
 0x270   :  { %1553 = vst [vmem:[#allocation2] sm:$0xff] %v1552_v50 }
 0x271   :  { %2044 = shalt.err (!%p2041_p4)
}
 0x272   :  { %s2045_s29 = scalar_lea.hbm %s3479_s3, 128 }
 0x273   :  { %p2046_p5 = scmp.ne.s32.totalorder %s3479_s3, %s2045_s29  ;;  %p2049_p6 = scmp.lt.u32.totalorder %s2045_s29, %s3479_s3 }
 0x275   :  { %p2051_p7 = pnand %p2049_p6, %p2046_p5 }
 0x277   :  { %2054 = shalt.err (!%p2051_p7)
}
 0x278   :  { %1563 = dma.vmem_to_hbm [thread:$0]  %s1561_s25, 128, %s3479_s3, [#allocation3]  }
 0x279   :  { %2055 = dma.done.wait [#allocation3], 128  }
 0x27a   :  { %2056 = vsyncadd [#allocation3], 4294967168 }
 0x27b   :  { %1567 = vsyncpa [#allocation3], 1 }

</bundles_post_ra>
